<compile_context>
chip_gen: v5e
topology: v5e:2x2
jax: 0.10.0
libtpu: 0.0.40
codegen_flags: <defaults>
</compile_context>

<pallas_src>
import functools

import jax
import jax.numpy as jnp
from jax.experimental import pallas as pl
from jax.experimental.pallas import tpu as pltpu

BN_EPS = 1e-5  # PyTorch BatchNorm1d default eps


def _round_up(x, m):
    return ((x + m - 1) // m) * m


# ----------------------------- Pallas kernel ------------------------------ #
def zhangnet_kernel(
    k_ref,                       # SMEM (1,1) f32 : sparsity threshold k
    x_ref,                       # VMEM (N, bands_p)            bf16 (pre-cast)
    w1_ref, b1_ref,              # weighter Linear(bands_p, 512) bf16 / f32
    w2_ref, b2_ref,              # weighter Linear(512, bands_p) bf16 / f32
    cw1_ref, cb1_ref,            # classnet Linear(bands_p, 384) bf16 / f32
    g1_ref, be1_ref,             # BatchNorm1d(384) gamma / beta (zero-padded)
    cw2_ref, cb2_ref,            # classnet Linear(384, 256)     bf16 / f32
    g2_ref, be2_ref,             # BatchNorm1d(256) gamma / beta (zero-padded)
    cw3_ref, cb3_ref,            # classnet Linear(256, ncls_p)  bf16 / f32
    ws_ref,                      # out: (2, bands_p) f32 — row0 = chw, row1 = sw
    out_ref,                     # out: (N, ncls_p) f32 logits
    *, matmul_dtype,
):
    x = x_ref[...]                                            # (N, bands_p) bf16

    # --- weighter: Linear -> ReLU -> Linear (bf16 MXU, f32 accumulate) -----
    h = jnp.dot(x, w1_ref[...], preferred_element_type=jnp.float32) + b1_ref[...]
    h = jnp.maximum(h, 0.0)
    cw_full = (jnp.dot(h.astype(matmul_dtype), w2_ref[...],
                       preferred_element_type=jnp.float32) + b2_ref[...])

    # --- abs + mean over batch -> (1, bands_p); result is >= 0 -------------
    chw = jnp.mean(jnp.abs(cw_full), axis=0, keepdims=True)

    # --- Sparse threshold (chw >= 0, so no abs needed) ----------------------
    k = k_ref[0, 0]
    sw = jnp.where(chw < k, 0.0, chw)

    # Packed lane-dense small output: one store instead of two masked ones.
    ws_ref[...] = jnp.concatenate([chw, sw], axis=0)           # (2, bands_p)

    # --- classnet layer 1: fold diag(sw) into the weight, Linear -> ReLU -> BN
    # Fold cost is bands_p*384 (batch-size independent); the (1,bands_p) ->
    # (bands_p,1) transpose runs on the XLU (free slot-wise).
    cw1_scaled = (jnp.transpose(sw) * cw1_ref[...]).astype(matmul_dtype)
    h1 = jnp.dot(x, cw1_scaled, preferred_element_type=jnp.float32) + cb1_ref[...]
    h1 = jnp.maximum(h1, 0.0)

    # Single-pass BN statistics (training-mode, biased variance).
    mu1 = jnp.mean(h1, axis=0, keepdims=True)
    ex2_1 = jnp.mean(h1 * h1, axis=0, keepdims=True)
    var1 = jnp.maximum(ex2_1 - mu1 * mu1, 0.0)
    h1 = (h1 - mu1) * jax.lax.rsqrt(var1 + BN_EPS) * g1_ref[...] + be1_ref[...]

    # --- classnet layer 2: Linear(384,256) -> ReLU -> BN --------------------
    h2 = (jnp.dot(h1.astype(matmul_dtype), cw2_ref[...],
                  preferred_element_type=jnp.float32) + cb2_ref[...])
    h2 = jnp.maximum(h2, 0.0)
    mu2 = jnp.mean(h2, axis=0, keepdims=True)
    ex2_2 = jnp.mean(h2 * h2, axis=0, keepdims=True)
    var2 = jnp.maximum(ex2_2 - mu2 * mu2, 0.0)
    h2 = (h2 - mu2) * jax.lax.rsqrt(var2 + BN_EPS) * g2_ref[...] + be2_ref[...]

    # --- classnet layer 3: Linear(256, ncls_p) — lane-dense store -----------
    out_ref[...] = (jnp.dot(h2.astype(matmul_dtype), cw3_ref[...],
                            preferred_element_type=jnp.float32) + cb3_ref[...])


# ------------------------------ Python glue ------------------------------- #
def get_k(epoch, l0_norm, last_k=0.0):
    """Replicates Sparse.get_k (pure host-side Python scalar logic)."""
    l0_norm_threshold = 40
    start, end = 250, 500
    minimum, maximum = 0.0, 1.0
    if l0_norm <= l0_norm_threshold:
        return last_k
    if epoch < start:
        return minimum
    elif epoch > end:
        return maximum
    else:
        return (epoch - start) * (maximum / (end - start))


def prepare_params(params, matmul_dtype=jnp.bfloat16):
    """One-time weight prep: lane-dense zero padding + bf16 pre-cast.

    Call once per parameter update; the returned dict is what
    `zhangnet_forward` consumes.  Padded weight rows/cols, biases and BN
    gamma/beta are zero, so padded activation columns stay exactly zero and
    are sliced away after the kernel.
    """
    bands = params["w1"].shape[0]
    ncls = params["cw3"].shape[1]
    h1, h2 = params["cw1"].shape[1], params["cw2"].shape[1]

    bands_p = _round_up(bands, 128)
    h1_p = _round_up(h1, 128)        # 300 -> 384
    h2_p = _round_up(h2, 128)        # 200 -> 256
    ncls_p = _round_up(ncls, 128)

    def pad2(a, r, c):
        return jnp.pad(a, ((0, r - a.shape[0]), (0, c - a.shape[1])))

    prep = dict(
        w1=pad2(params["w1"], bands_p, 512).astype(matmul_dtype),
        b1=params["b1"],
        w2=pad2(params["w2"], 512, bands_p).astype(matmul_dtype),
        b2=pad2(params["b2"], 1, bands_p),
        cw1=pad2(params["cw1"], bands_p, h1_p).astype(matmul_dtype),
        cb1=pad2(params["cb1"], 1, h1_p),
        g1=pad2(params["g1"], 1, h1_p),
        be1=pad2(params["be1"], 1, h1_p),
        cw2=pad2(params["cw2"], h1_p, h2_p).astype(matmul_dtype),
        cb2=pad2(params["cb2"], 1, h2_p),
        g2=pad2(params["g2"], 1, h2_p),
        be2=pad2(params["be2"], 1, h2_p),
        cw3=pad2(params["cw3"], h2_p, ncls_p).astype(matmul_dtype),
        cb3=pad2(params["cb3"], 1, ncls_p),
    )
    meta = dict(bands=bands, bands_p=bands_p, ncls=ncls, ncls_p=ncls_p,
                h1_p=h1_p, h2_p=h2_p, matmul_dtype=matmul_dtype)
    return prep, meta


def zhangnet_forward(prep, meta, x, epoch, l0_norm, last_k=0.0):
    n, bands = x.shape
    assert bands == meta["bands"]
    bands_p, ncls, ncls_p = meta["bands_p"], meta["ncls"], meta["ncls_p"]
    h1_p, h2_p = meta["h1_p"], meta["h2_p"]
    matmul_dtype = meta["matmul_dtype"]

    k = get_k(epoch, l0_norm, last_k)
    k_arr = jnp.full((1, 1), k, dtype=jnp.float32)

    # x is only consumed by MXU matmuls (reweight is folded into cw1), so it
    # can be padded + cast to bf16 in the wrapper: halves the x DMA.
    x_p = jnp.pad(x, ((0, 0), (0, bands_p - bands))).astype(matmul_dtype)

    kernel = functools.partial(zhangnet_kernel, matmul_dtype=matmul_dtype)

    vmem = pl.BlockSpec(memory_space=pltpu.MemorySpace.VMEM)
    smem = pl.BlockSpec(memory_space=pltpu.MemorySpace.SMEM)

    args = (
        k_arr, x_p,
        prep["w1"], prep["b1"], prep["w2"], prep["b2"],
        prep["cw1"], prep["cb1"], prep["g1"], prep["be1"],
        prep["cw2"], prep["cb2"], prep["g2"], prep["be2"],
        prep["cw3"], prep["cb3"],
    )
    in_specs = [smem] + [vmem] * (len(args) - 1)

    out_shape = (
        jax.ShapeDtypeStruct((2, bands_p), jnp.float32),       # [chw ; sw]
        jax.ShapeDtypeStruct((n, ncls_p), jnp.float32),        # padded logits
    )

    # Advisory cost + VMEM sizing (v7x has 64 MiB physical VMEM; leave room).
    in_bytes = sum(int(a.size) * a.dtype.itemsize for a in args)
    out_bytes = 2 * bands_p * 4 + n * ncls_p * 4
    inter_bytes = (n * (512 + bands_p + h1_p + h2_p + ncls_p) * 4    # f32 acts
                   + n * (512 + h1_p + h2_p) * 2)                    # bf16 copies
    flops = 2 * n * (bands_p * 512 + 512 * bands_p + bands_p * h1_p
                     + h1_p * h2_p + h2_p * ncls_p)
    cost = pl.CostEstimate(flops=flops,
                           transcendentals=h1_p + h2_p,              # 2x rsqrt rows
                           bytes_accessed=in_bytes + out_bytes)
    vmem_limit = int(min(max(2 * (in_bytes + out_bytes + inter_bytes),
                             32 * 1024 * 1024),
                         64 * 1024 * 1024))

    ws, out = pl.pallas_call(
        kernel,
        out_shape=out_shape,
        in_specs=in_specs,
        out_specs=(vmem, vmem),
        compiler_params=pltpu.CompilerParams(vmem_limit_bytes=vmem_limit),
        cost_estimate=cost,
    )(*args)

    # PyTorch returns 1-D (bands,) channel / sparse weights; slice off padding.
    return ws[0, :bands], ws[1, :bands], out[:, :ncls]


def init_params(key, bands, number_of_classes):
    """Deterministic PyTorch-style (uniform ±1/sqrt(fan_in)) init."""
    def linear(k, fan_in, fan_out):
        kw, kb = jax.random.split(k)
        bound = 1.0 / jnp.sqrt(fan_in)
        w = jax.random.uniform(kw, (fan_in, fan_out), jnp.float32, -bound, bound)
        b = jax.random.uniform(kb, (1, fan_out), jnp.float32, -bound, bound)
        return w, b

    keys = jax.random.split(key, 5)
    w1, b1 = linear(keys[0], bands, 512)                    # weighter[0]
    w2, b2 = linear(keys[1], 512, bands)                    # weighter[2]
    cw1, cb1 = linear(keys[2], bands, 300)                  # classnet[0]
    cw2, cb2 = linear(keys[3], 300, 200)                    # classnet[3]
    cw3, cb3 = linear(keys[4], 200, number_of_classes)      # classnet[6]

    return dict(
        w1=w1, b1=b1, w2=w2, b2=b2,
        cw1=cw1, cb1=cb1,
        g1=jnp.ones((1, 300), jnp.float32), be1=jnp.zeros((1, 300), jnp.float32),
        cw2=cw2, cb2=cb2,
        g2=jnp.ones((1, 200), jnp.float32), be2=jnp.zeros((1, 200), jnp.float32),
        cw3=cw3, cb3=cb3,
    )


if __name__ == "__main__":
    batch, bands, number_of_classes = 8, 32, 6
    # last_layer_input is unused in the PyTorch forward pass.

    key = jax.random.PRNGKey(0)
    kp, kx = jax.random.split(key)
    params = init_params(kp, bands, number_of_classes)
    prep, meta = prepare_params(params)                     # one-time weight prep
    x = jax.random.normal(kx, (batch, bands), jnp.float32)

    # epoch=300, l0_norm=50  ->  k = (300-250) * (1/250) = 0.2
    channel_weights, sparse_weights, output = zhangnet_forward(
        prep, meta, x, epoch=300, l0_norm=50
    )
    jax.block_until_ready((channel_weights, sparse_weights, output))

    assert channel_weights.shape == (bands,)
    assert sparse_weights.shape == (bands,)
    assert output.shape == (batch, number_of_classes)
    print("KERNEL_OK")
</pallas_src>

<mosaic_0001>
module attributes {stable_mosaic.version = 11 : i64} {
  func.func @zhangnet_kernel(%arg0: memref<1x1xf32, #tpu.memory_space<smem>>, %arg1: memref<8x128xbf16, #tpu.memory_space<vmem>>, %arg2: memref<128x512xbf16, #tpu.memory_space<vmem>>, %arg3: memref<1x512xf32, #tpu.memory_space<vmem>>, %arg4: memref<512x128xbf16, #tpu.memory_space<vmem>>, %arg5: memref<1x128xf32, #tpu.memory_space<vmem>>, %arg6: memref<128x384xbf16, #tpu.memory_space<vmem>>, %arg7: memref<1x384xf32, #tpu.memory_space<vmem>>, %arg8: memref<1x384xf32, #tpu.memory_space<vmem>>, %arg9: memref<1x384xf32, #tpu.memory_space<vmem>>, %arg10: memref<384x256xbf16, #tpu.memory_space<vmem>>, %arg11: memref<1x256xf32, #tpu.memory_space<vmem>>, %arg12: memref<1x256xf32, #tpu.memory_space<vmem>>, %arg13: memref<1x256xf32, #tpu.memory_space<vmem>>, %arg14: memref<256x128xbf16, #tpu.memory_space<vmem>>, %arg15: memref<1x128xf32, #tpu.memory_space<vmem>>, %arg16: memref<2x128xf32, #tpu.memory_space<vmem>>, %arg17: memref<8x128xf32, #tpu.memory_space<vmem>>) attributes {dimension_semantics = [], scalar_prefetch = 0 : i64, scratch_operands = 0 : i64, tpu.core_type = #tpu.core_type<tc>} {
    %c0 = arith.constant 0 : index
    %c0_0 = arith.constant 0 : index
    %0 = vector.load %arg1[%c0, %c0_0] : memref<8x128xbf16, #tpu.memory_space<vmem>>, vector<8x128xbf16>
    %c0_1 = arith.constant 0 : index
    %c0_2 = arith.constant 0 : index
    %1 = vector.load %arg2[%c0_1, %c0_2] : memref<128x512xbf16, #tpu.memory_space<vmem>>, vector<128x512xbf16>
    %cst = arith.constant dense<0.000000e+00> : vector<8x512xf32>
    %2 = tpu.matmul %0, %1, %cst {dimension_numbers = #tpu.dot_dimension_numbers<[1], [0], [0], [1], [0, 0, 1, 1], [], []>} : vector<8x128xbf16>, vector<128x512xbf16>, vector<8x512xf32> -> vector<8x512xf32>
    %c0_3 = arith.constant 0 : index
    %c0_4 = arith.constant 0 : index
    %3 = vector.load %arg3[%c0_3, %c0_4] : memref<1x512xf32, #tpu.memory_space<vmem>>, vector<1x512xf32>
    %4 = vector.broadcast %3 : vector<1x512xf32> to vector<8x512xf32>
    %5 = arith.addf %2, %4 : vector<8x512xf32>
    %cst_5 = arith.constant 0.000000e+00 : f32
    %6 = vector.broadcast %cst_5 : f32 to vector<8x512xf32>
    %7 = arith.maximumf %5, %6 : vector<8x512xf32>
    %8 = arith.truncf %7 : vector<8x512xf32> to vector<8x512xbf16>
    %c0_6 = arith.constant 0 : index
    %c0_7 = arith.constant 0 : index
    %9 = vector.load %arg4[%c0_6, %c0_7] : memref<512x128xbf16, #tpu.memory_space<vmem>>, vector<512x128xbf16>
    %cst_8 = arith.constant dense<0.000000e+00> : vector<8x128xf32>
    %10 = tpu.matmul %8, %9, %cst_8 {dimension_numbers = #tpu.dot_dimension_numbers<[1], [0], [0], [1], [0, 0, 1, 1], [], []>} : vector<8x512xbf16>, vector<512x128xbf16>, vector<8x128xf32> -> vector<8x128xf32>
    %c0_9 = arith.constant 0 : index
    %c0_10 = arith.constant 0 : index
    %11 = vector.load %arg5[%c0_9, %c0_10] : memref<1x128xf32, #tpu.memory_space<vmem>>, vector<1x128xf32>
    %12 = vector.broadcast %11 : vector<1x128xf32> to vector<8x128xf32>
    %13 = arith.addf %10, %12 : vector<8x128xf32>
    %14 = math.absf %13 : vector<8x128xf32>
    %cst_11 = arith.constant dense<0.000000e+00> : vector<128xf32>
    %15 = vector.multi_reduction <add>, %14, %cst_11 [0] : vector<8x128xf32> to vector<128xf32>
    %16 = vector.shape_cast %15 : vector<128xf32> to vector<1x128xf32>
    %cst_12 = arith.constant 8.000000e+00 : f32
    %17 = vector.broadcast %cst_12 : f32 to vector<1x128xf32>
    %18 = arith.divf %16, %17 : vector<1x128xf32>
    %c0_13 = arith.constant 0 : index
    %c0_14 = arith.constant 0 : index
    %19 = memref.load %arg0[%c0_13, %c0_14] : memref<1x1xf32, #tpu.memory_space<smem>>
    %20 = vector.broadcast %19 : f32 to vector<1x128xf32>
    %21 = arith.cmpf olt, %18, %20 : vector<1x128xf32>
    %cst_15 = arith.constant 0.000000e+00 : f32
    %22 = vector.broadcast %cst_15 : f32 to vector<1x128xf32>
    %23 = arith.select %21, %22, %18 : vector<1x128xi1>, vector<1x128xf32>
    %24 = tpu.concatenate %18, %23 in 0 : vector<1x128xf32>, vector<1x128xf32> -> vector<2x128xf32>
    %c0_16 = arith.constant 0 : index
    %c0_17 = arith.constant 0 : index
    %25 = vector.load %arg16[%c0_16, %c0_17] : memref<2x128xf32, #tpu.memory_space<vmem>>, vector<2x128xf32>
    tpu.vector_store %arg16[%c0_16, %c0_17], %24 {strides = array<i32>} : memref<2x128xf32, #tpu.memory_space<vmem>>, vector<2x128xf32>,
    %26 = tpu.transpose %23, [1, 0] : vector<1x128xf32> -> vector<128x1xf32>
    %c0_18 = arith.constant 0 : index
    %c0_19 = arith.constant 0 : index
    %27 = vector.load %arg6[%c0_18, %c0_19] : memref<128x384xbf16, #tpu.memory_space<vmem>>, vector<128x384xbf16>
    %28 = arith.extf %27 : vector<128x384xbf16> to vector<128x384xf32>
    %29 = vector.broadcast %26 : vector<128x1xf32> to vector<128x384xf32>
    %30 = arith.mulf %29, %28 : vector<128x384xf32>
    %31 = arith.truncf %30 : vector<128x384xf32> to vector<128x384xbf16>
    %cst_20 = arith.constant dense<0.000000e+00> : vector<8x384xf32>
    %32 = tpu.matmul %0, %31, %cst_20 {dimension_numbers = #tpu.dot_dimension_numbers<[1], [0], [0], [1], [0, 0, 1, 1], [], []>} : vector<8x128xbf16>, vector<128x384xbf16>, vector<8x384xf32> -> vector<8x384xf32>
    %c0_21 = arith.constant 0 : index
    %c0_22 = arith.constant 0 : index
    %33 = vector.load %arg7[%c0_21, %c0_22] : memref<1x384xf32, #tpu.memory_space<vmem>>, vector<1x384xf32>
    %34 = vector.broadcast %33 : vector<1x384xf32> to vector<8x384xf32>
    %35 = arith.addf %32, %34 : vector<8x384xf32>
    %cst_23 = arith.constant 0.000000e+00 : f32
    %36 = vector.broadcast %cst_23 : f32 to vector<8x384xf32>
    %37 = arith.maximumf %35, %36 : vector<8x384xf32>
    %cst_24 = arith.constant dense<0.000000e+00> : vector<384xf32>
    %38 = vector.multi_reduction <add>, %37, %cst_24 [0] : vector<8x384xf32> to vector<384xf32>
    %39 = vector.shape_cast %38 : vector<384xf32> to vector<1x384xf32>
    %cst_25 = arith.constant 8.000000e+00 : f32
    %40 = vector.broadcast %cst_25 : f32 to vector<1x384xf32>
    %41 = arith.divf %39, %40 : vector<1x384xf32>
    %42 = arith.mulf %37, %37 : vector<8x384xf32>
    %cst_26 = arith.constant dense<0.000000e+00> : vector<384xf32>
    %43 = vector.multi_reduction <add>, %42, %cst_26 [0] : vector<8x384xf32> to vector<384xf32>
    %44 = vector.shape_cast %43 : vector<384xf32> to vector<1x384xf32>
    %cst_27 = arith.constant 8.000000e+00 : f32
    %45 = vector.broadcast %cst_27 : f32 to vector<1x384xf32>
    %46 = arith.divf %44, %45 : vector<1x384xf32>
    %47 = arith.mulf %41, %41 : vector<1x384xf32>
    %48 = arith.subf %46, %47 : vector<1x384xf32>
    %cst_28 = arith.constant 0.000000e+00 : f32
    %49 = vector.broadcast %cst_28 : f32 to vector<1x384xf32>
    %50 = arith.maximumf %48, %49 : vector<1x384xf32>
    %51 = vector.broadcast %41 : vector<1x384xf32> to vector<8x384xf32>
    %52 = arith.subf %37, %51 : vector<8x384xf32>
    %cst_29 = arith.constant 9.99999974E-6 : f32
    %53 = vector.broadcast %cst_29 : f32 to vector<1x384xf32>
    %54 = arith.addf %50, %53 : vector<1x384xf32>
    %55 = math.rsqrt %54 : vector<1x384xf32>
    %56 = vector.broadcast %55 : vector<1x384xf32> to vector<8x384xf32>
    %57 = arith.mulf %52, %56 : vector<8x384xf32>
    %c0_30 = arith.constant 0 : index
    %c0_31 = arith.constant 0 : index
    %58 = vector.load %arg8[%c0_30, %c0_31] : memref<1x384xf32, #tpu.memory_space<vmem>>, vector<1x384xf32>
    %59 = vector.broadcast %58 : vector<1x384xf32> to vector<8x384xf32>
    %60 = arith.mulf %57, %59 : vector<8x384xf32>
    %c0_32 = arith.constant 0 : index
    %c0_33 = arith.constant 0 : index
    %61 = vector.load %arg9[%c0_32, %c0_33] : memref<1x384xf32, #tpu.memory_space<vmem>>, vector<1x384xf32>
    %62 = vector.broadcast %61 : vector<1x384xf32> to vector<8x384xf32>
    %63 = arith.addf %60, %62 : vector<8x384xf32>
    %64 = arith.truncf %63 : vector<8x384xf32> to vector<8x384xbf16>
    %c0_34 = arith.constant 0 : index
    %c0_35 = arith.constant 0 : index
    %65 = vector.load %arg10[%c0_34, %c0_35] : memref<384x256xbf16, #tpu.memory_space<vmem>>, vector<384x256xbf16>
    %cst_36 = arith.constant dense<0.000000e+00> : vector<8x256xf32>
    %66 = tpu.matmul %64, %65, %cst_36 {dimension_numbers = #tpu.dot_dimension_numbers<[1], [0], [0], [1], [0, 0, 1, 1], [], []>} : vector<8x384xbf16>, vector<384x256xbf16>, vector<8x256xf32> -> vector<8x256xf32>
    %c0_37 = arith.constant 0 : index
    %c0_38 = arith.constant 0 : index
    %67 = vector.load %arg11[%c0_37, %c0_38] : memref<1x256xf32, #tpu.memory_space<vmem>>, vector<1x256xf32>
    %68 = vector.broadcast %67 : vector<1x256xf32> to vector<8x256xf32>
    %69 = arith.addf %66, %68 : vector<8x256xf32>
    %cst_39 = arith.constant 0.000000e+00 : f32
    %70 = vector.broadcast %cst_39 : f32 to vector<8x256xf32>
    %71 = arith.maximumf %69, %70 : vector<8x256xf32>
    %cst_40 = arith.constant dense<0.000000e+00> : vector<256xf32>
    %72 = vector.multi_reduction <add>, %71, %cst_40 [0] : vector<8x256xf32> to vector<256xf32>
    %73 = vector.shape_cast %72 : vector<256xf32> to vector<1x256xf32>
    %cst_41 = arith.constant 8.000000e+00 : f32
    %74 = vector.broadcast %cst_41 : f32 to vector<1x256xf32>
    %75 = arith.divf %73, %74 : vector<1x256xf32>
    %76 = arith.mulf %71, %71 : vector<8x256xf32>
    %cst_42 = arith.constant dense<0.000000e+00> : vector<256xf32>
    %77 = vector.multi_reduction <add>, %76, %cst_42 [0] : vector<8x256xf32> to vector<256xf32>
    %78 = vector.shape_cast %77 : vector<256xf32> to vector<1x256xf32>
    %cst_43 = arith.constant 8.000000e+00 : f32
    %79 = vector.broadcast %cst_43 : f32 to vector<1x256xf32>
    %80 = arith.divf %78, %79 : vector<1x256xf32>
    %81 = arith.mulf %75, %75 : vector<1x256xf32>
    %82 = arith.subf %80, %81 : vector<1x256xf32>
    %cst_44 = arith.constant 0.000000e+00 : f32
    %83 = vector.broadcast %cst_44 : f32 to vector<1x256xf32>
    %84 = arith.maximumf %82, %83 : vector<1x256xf32>
    %85 = vector.broadcast %75 : vector<1x256xf32> to vector<8x256xf32>
    %86 = arith.subf %71, %85 : vector<8x256xf32>
    %cst_45 = arith.constant 9.99999974E-6 : f32
    %87 = vector.broadcast %cst_45 : f32 to vector<1x256xf32>
    %88 = arith.addf %84, %87 : vector<1x256xf32>
    %89 = math.rsqrt %88 : vector<1x256xf32>
    %90 = vector.broadcast %89 : vector<1x256xf32> to vector<8x256xf32>
    %91 = arith.mulf %86, %90 : vector<8x256xf32>
    %c0_46 = arith.constant 0 : index
    %c0_47 = arith.constant 0 : index
    %92 = vector.load %arg12[%c0_46, %c0_47] : memref<1x256xf32, #tpu.memory_space<vmem>>, vector<1x256xf32>
    %93 = vector.broadcast %92 : vector<1x256xf32> to vector<8x256xf32>
    %94 = arith.mulf %91, %93 : vector<8x256xf32>
    %c0_48 = arith.constant 0 : index
    %c0_49 = arith.constant 0 : index
    %95 = vector.load %arg13[%c0_48, %c0_49] : memref<1x256xf32, #tpu.memory_space<vmem>>, vector<1x256xf32>
    %96 = vector.broadcast %95 : vector<1x256xf32> to vector<8x256xf32>
    %97 = arith.addf %94, %96 : vector<8x256xf32>
    %98 = arith.truncf %97 : vector<8x256xf32> to vector<8x256xbf16>
    %c0_50 = arith.constant 0 : index
    %c0_51 = arith.constant 0 : index
    %99 = vector.load %arg14[%c0_50, %c0_51] : memref<256x128xbf16, #tpu.memory_space<vmem>>, vector<256x128xbf16>
    %cst_52 = arith.constant dense<0.000000e+00> : vector<8x128xf32>
    %100 = tpu.matmul %98, %99, %cst_52 {dimension_numbers = #tpu.dot_dimension_numbers<[1], [0], [0], [1], [0, 0, 1, 1], [], []>} : vector<8x256xbf16>, vector<256x128xbf16>, vector<8x128xf32> -> vector<8x128xf32>
    %c0_53 = arith.constant 0 : index
    %c0_54 = arith.constant 0 : index
    %101 = vector.load %arg15[%c0_53, %c0_54] : memref<1x128xf32, #tpu.memory_space<vmem>>, vector<1x128xf32>
    %102 = vector.broadcast %101 : vector<1x128xf32> to vector<8x128xf32>
    %103 = arith.addf %100, %102 : vector<8x128xf32>
    %c0_55 = arith.constant 0 : index
    %c0_56 = arith.constant 0 : index
    %104 = vector.load %arg17[%c0_55, %c0_56] : memref<8x128xf32, #tpu.memory_space<vmem>>, vector<8x128xf32>
    tpu.vector_store %arg17[%c0_55, %c0_56], %103 {strides = array<i32>} : memref<8x128xf32, #tpu.memory_space<vmem>>, vector<8x128xf32>,
    return
  }
}

</mosaic_0001>

<bundles_post_ra>
// kernel: tpu_custom_call.1
= control target key start
LH: loop header
LB: loop body
LE: loop exit
PB: predicated region body
PF: predicated region fallthrough
CT: control target
= control target key end

     0   :  { %s3104_s0 = inlined_call_operand.<no memory space> [shape: f32[1,1], index: 0, kind: input, shape index: {}]   ;;  %s3105_s1 = inlined_call_operand.hbm [shape: bf16[8,128], index: 1, kind: input, shape index: {}]   ;;  %s3106_s2 = inlined_call_operand.hbm [shape: bf16[128,512], index: 2, kind: input, shape index: {}]   ;;  %s3107_s3 = inlined_call_operand.hbm [shape: f32[1,512], index: 3, kind: input, shape index: {}]   ;;  %s3108_s4 = inlined_call_operand.hbm [shape: bf16[512,128], index: 4, kind: input, shape index: {}]   ;;  %s3109_s5 = inlined_call_operand.hbm [shape: f32[1,128], index: 5, kind: input, shape index: {}]   ;;  %s3110_s6 = inlined_call_operand.hbm [shape: bf16[128,384], index: 6, kind: input, shape index: {}]   ;;  %s3111_s7 = inlined_call_operand.vmem [shape: f32[1,384], index: 7, kind: input, shape index: {}]   ;;  %s3112_s8 = inlined_call_operand.vmem [shape: f32[1,384], index: 8, kind: input, shape index: {}]   ;;  %s3113_s9 = inlined_call_operand.vmem [shape: f32[1,384], index: 9, kind: input, shape index: {}]   ;;  %s3114_s10 = inlined_call_operand.hbm [shape: bf16[384,256], index: 10, kind: input, shape index: {}]   ;;  %s3115_s11 = inlined_call_operand.vmem [shape: f32[1,256], index: 11, kind: input, shape index: {}]   ;;  %s3116_s12 = inlined_call_operand.hbm [shape: f32[1,256], index: 12, kind: input, shape index: {}]   ;;  %s3117_s13 = inlined_call_operand.vmem [shape: f32[1,256], index: 13, kind: input, shape index: {}]   ;;  %s3118_s14 = inlined_call_operand.hbm [shape: bf16[256,128], index: 14, kind: input, shape index: {}]   ;;  %s3119_s15 = inlined_call_operand.vmem [shape: f32[1,128], index: 15, kind: input, shape index: {}]   ;;  %s3120_s16 = inlined_call_operand.hbm [shape: f32[2,128], index: 16, kind: output, shape index: {0}]   ;;  %s3121_s17 = inlined_call_operand.hbm [shape: f32[8,128], index: 17, kind: output, shape index: {1}]  }
   0x1   :  { %3123 = sst [smem:[#allocation28_spill]] %s3104_s0 }
   0x2   :  { %3124 = sst [smem:[#allocation29_spill]] %s3105_s1 }
   0x3   :  { %24 = vsyncpa [#allocation4], 0 }
   0x4   :  { %25 = vsyncpa [#allocation7], 0 }
   0x5   :  { %26 = vsyncpa [#allocation10], 0 }
   0x6   :  { %27 = vsyncpa [#allocation13], 0 }
   0x7   :  { %28 = vsyncpa [#allocation16], 0 }
   0x8   :  { %29 = vsyncpa [#allocation5], 0  ;;  %s48_s26 = sshll.u32 %s3106_s2, 4  ;;  %s49_s26 = int_to_ptr.hbm [resolvable:$true] %s48_s26 }
   0x9   :  { %30 = vsyncpa [#allocation20], 0  ;;  %s2826_s27 = smov [#allocation6]   ;;  %s72_s30 = sshll.u32 %s3108_s4, 4  ;;  %s73_s30 = int_to_ptr.hbm [resolvable:$true] %s72_s30 }
   0xa   :  { %s50_s28 = sshll.u32 %s2826_s27, 4  ;;  %s2827_s18 = smov 256   ;;  %s51_s28 = int_to_ptr.vmem [resolvable:$true] %s50_s28 }
   0xb   :  { %s2828_s19 = smov 16   ;;  %s2829_s1 = smov [#allocation9]  }
   0xc   :  { %56 = dma.hbm_to_vmem [thread:$0]  %s49_s26, 4096, %s51_s28, [#allocation7], %s2827_s18, %s2827_s18, %s2828_s19  }
   0xd   :  { %s74_s20 = sshll.u32 %s2829_s1, 4  ;;  %s3122_s21 = smov 64   ;;  %s75_s20 = int_to_ptr.vmem [resolvable:$true] %s74_s20 }
   0xe   :  { %s2831_s22 = smov 4   ;;  %s96_s24 = sshll.u32 %s3110_s6, 4  ;;  %s97_s24 = int_to_ptr.hbm [resolvable:$true] %s96_s24 }
   0xf   :  { %80 = dma.hbm_to_vmem [thread:$0]  %s73_s30, 4096, %s75_s20, [#allocation10], %s3122_s21, %s3122_s21, %s2831_s22  }
  0x10   :  { %s2832_s25 = smov [#allocation12]   ;;  %s131_s28 = sshll.u32 %s3116_s12, 4  ;;  %s132_s28 = int_to_ptr.hbm [resolvable:$true] %s131_s28 }
  0x11   :  { %s98_s4 = sshll.u32 %s2832_s25, 4  ;;  %s2833_s29 = smov 192   ;;  %s99_s4 = int_to_ptr.vmem [resolvable:$true] %s98_s4 }
  0x12   :  { %s2834_s0 = smov 12   ;;  %s2835_s18 = smov [#allocation15]  }
  0x13   :  { %104 = dma.hbm_to_vmem [thread:$0]  %s97_s24, 3072, %s99_s4, [#allocation13], %s2833_s29, %s2833_s29, %s2834_s0  }
  0x14   :  { %s133_s19 = sshll.u32 %s2835_s18, 4  ;;  %s3125_s20 = sld [smem:[#allocation29_spill]]  ;;  %s134_s19 = int_to_ptr.vmem [resolvable:$true] %s133_s19 }
  0x15   :  { %136 = dma.hbm_to_vmem [thread:$0]  %s132_s28, 32, %s134_s19, [#allocation16]  }
  0x16   :  { %s62_s23 = sshll.u32 %s3107_s3, 4  ;;  %s2836_s25 = smov [#allocation3]   ;;  %s63_s23 = int_to_ptr.hbm [resolvable:$true] %s62_s23 }
  0x17   :  { %s40_s27 = sshll.u32 %s2836_s25, 4  ;;  %s2837_s12 = smov [#allocation8]   ;;  %s41_s27 = int_to_ptr.vmem [resolvable:$true] %s40_s27 }
  0x18   :  { %s64_s24 = sshll.u32 %s2837_s12, 4  ;;  %s86_s29 = sshll.u32 %s3109_s5, 4  ;;  %s65_s24 = int_to_ptr.vmem [resolvable:$true] %s64_s24  ;;  %s87_s29 = int_to_ptr.hbm [resolvable:$true] %s86_s29 }
  0x19   :  { %67 = dma.hbm_to_vmem [thread:$0]  %s63_s23, 64, %s65_s24, [#allocation7]  }
  0x1a   :  { %s38_s21 = sshll.u32 %s3125_s20, 4  ;;  %s115_s18 = sshll.u32 %s3114_s10, 4  ;;  %s39_s21 = int_to_ptr.hbm [resolvable:$true] %s38_s21  ;;  %s116_s18 = int_to_ptr.hbm [resolvable:$true] %s115_s18 }
  0x1b   :  { %43 = dma.hbm_to_vmem [thread:$0]  %s39_s21, 64, %s41_s27, [#allocation4]  }
  0x1c   :  { %s2838_s19 = smov [#allocation11]   ;;  %s2839_s1 = smov [#allocation14]  }
  0x1d   :  { %s88_s3 = sshll.u32 %s2838_s19, 4  ;;  %s117_s21 = sshll.u32 %s2839_s1, 4  ;;  %s89_s3 = int_to_ptr.vmem [resolvable:$true] %s88_s3  ;;  %s118_s21 = int_to_ptr.vmem [resolvable:$true] %s117_s21 }
  0x1e   :  { %91 = dma.hbm_to_vmem [thread:$0]  %s87_s29, 16, %s89_s3, [#allocation10]  }
  0x1f   :  { %s2840_s30 = smov 128   ;;  %s2841_s20 = smov 8  }
  0x20   :  { %123 = dma.hbm_to_vmem [thread:$0]  %s116_s18, 6144, %s118_s21, [#allocation13], %s2840_s30, %s2840_s30, %s2841_s20  }
  0x21   :  { %s143_s2 = sshll.u32 %s3118_s14, 4  ;;  %s2842_s23 = smov [#allocation17]   ;;  %s144_s2 = int_to_ptr.hbm [resolvable:$true] %s143_s2 }
  0x22   :  { %s145_s25 = sshll.u32 %s2842_s23, 4  ;;  %s3126_s10 = smov 64   ;;  %s146_s25 = int_to_ptr.vmem [resolvable:$true] %s145_s25 }
  0x23   :  { %151 = dma.hbm_to_vmem [thread:$0]  %s144_s2, 2048, %s146_s25, [#allocation16], %s3126_s10, %s3126_s10, %s2831_s22  }
  0x24   :  { %2812 = dma.done.wait [#allocation4], 64  }
  0x25   :  { %2813 = vsyncadd [#allocation4], 4294967232 }
  0x26   :  { %2814 = dma.done.wait [#allocation7], 4160  }
  0x27   :  { %2815 = vsyncadd [#allocation7], 4294963136 }
  0x28   :  { %2816 = dma.done.wait [#allocation10], 4112  }
  0x29   :  { %2817 = vsyncadd [#allocation10], 4294963184 }
  0x2a   :  { %2818 = dma.done.wait [#allocation13], 9216  }
  0x2b   :  { %2819 = vsyncadd [#allocation13], 4294958080 }
  0x2c   :  { %2820 = dma.done.wait [#allocation16], 2080  }
  0x2d   :  { %2821 = vsyncadd [#allocation16], 4294965216  ;;  %v1983_v0 = vld [vmem:[#allocation6 + $0xe0] sm:$0xf]  ;;  %v2411_v1 = vld [vmem:[#allocation6 + $0xec] sm:$0xf0] }
  0x2e   :  { %v1991_v2 = vld [vmem:[#allocation6 + $0xe8] sm:$0xf]  ;;  %v1984_v3 = vor.u32 %v2411_v1, %v1983_v0  ;;  %v2412_v4 = vld [vmem:[#allocation6 + $0xf4] sm:$0xf0]  ;;  %v2410_v5 = vld [vmem:[#allocation6 + $0xec] sm:$0xf] }
  0x2f   :  { %v1993_v6 = vld [vmem:[#allocation6 + $0xf8] sm:$0xf0]  ;;  %v1992_v7 = vor.u32 %v2412_v4, %v1991_v2  ;;  %v2409_v9 = vld [vmem:[#allocation6 + $0xe4] sm:$0xf]  ;;  %v1985_v10 = vld [vmem:[#allocation6 + $0xf0] sm:$0xf0] }
  0x30   :  { %v1996_v8 = vor.u32 %v2410_v5, %v1993_v6  ;;  %v1967_v11 = vld [vmem:[#allocation6 + $0xc0] sm:$0xf]  ;;  %393 = vmatpush.bf16.msra.mxu0 %v1984_v3  ;;  %v1988_v12 = vor.u32 %v2409_v9, %v1985_v10  ;;  %v2407_v13 = vld [vmem:[#allocation6 + $0xcc] sm:$0xf0]  ;;  %v1975_v14 = vld [vmem:[#allocation6 + $0xc8] sm:$0xf] }
  0x31   :  { %v2408_v15 = vld [vmem:[#allocation6 + $0xd4] sm:$0xf0]  ;;  %419 = vmatpush.bf16.msra.mxu2 %v1992_v7  ;;  %v1968_v16 = vor.u32 %v2407_v13, %v1967_v11  ;;  %v2406_v18 = vld [vmem:[#allocation6 + $0xcc] sm:$0xf]  ;;  %v1977_v19 = vld [vmem:[#allocation6 + $0xd8] sm:$0xf0] }
  0x32   :  { %432 = vmatpush.bf16.msra.mxu3 %v1996_v8  ;;  %v1976_v17 = vor.u32 %v2408_v15, %v1975_v14  ;;  %v2405_v20 = vld [vmem:[#allocation6 + $0xc4] sm:$0xf]  ;;  %406 = vmatpush.bf16.msra.mxu1 %v1988_v12  ;;  %v1980_v21 = vor.u32 %v2406_v18, %v1977_v19  ;;  %v1969_v22 = vld [vmem:[#allocation6 + $0xd0] sm:$0xf0]  ;;  %v1951_v23 = vld [vmem:[#allocation6 + $0xa0] sm:$0xf] }
  0x33   :  { %v2403_v24 = vld [vmem:[#allocation6 + $0xac] sm:$0xf0]  ;;  %v1972_v25 = vor.u32 %v2405_v20, %v1969_v22  ;;  %v1959_v26 = vld [vmem:[#allocation6 + $0xa8] sm:$0xf]  ;;  %v2404_v27 = vld [vmem:[#allocation6 + $0xb4] sm:$0xf0] }
  0x34   :  { %v2402_v28 = vld [vmem:[#allocation6 + $0xac] sm:$0xf]  ;;  %394 = vmatpush.bf16.msra.mxu0 %v1968_v16  ;;  %v1952_v29 = vor.u32 %v2403_v24, %v1951_v23  ;;  %v1961_v30 = vld [vmem:[#allocation6 + $0xb8] sm:$0xf0]  ;;  %v2401_v31 = vld [vmem:[#allocation6 + $0xa4] sm:$0xf]  ;;  %v1960_v33 = vor.u32 %v2404_v27, %v1959_v26 }
  0x35   :  { %v1953_v32 = vld [vmem:[#allocation6 + $0xb0] sm:$0xf0]  ;;  %420 = vmatpush.bf16.msra.mxu2 %v1976_v17  ;;  %v1964_v34 = vor.u32 %v2402_v28, %v1961_v30  ;;  %v1935_v35 = vld [vmem:[#allocation6 + $0x80] sm:$0xf]  ;;  %v2399_v36 = vld [vmem:[#allocation6 + $0x8c] sm:$0xf0] }
  0x36   :  { %433 = vmatpush.bf16.msra.mxu3 %v1980_v21  ;;  %v1943_v37 = vld [vmem:[#allocation6 + $0x88] sm:$0xf]  ;;  %407 = vmatpush.bf16.msra.mxu1 %v1972_v25  ;;  %v1956_v38 = vor.u32 %v2401_v31, %v1953_v32  ;;  %v2400_v39 = vld [vmem:[#allocation6 + $0x94] sm:$0xf0]  ;;  %v2398_v40 = vld [vmem:[#allocation6 + $0x8c] sm:$0xf]  ;;  %v1936_v44 = vor.u32 %v2399_v36, %v1935_v35 }
  0x37   :  { %v1945_v41 = vld [vmem:[#allocation6 + $0x98] sm:$0xf0]  ;;  %v2397_v42 = vld [vmem:[#allocation6 + $0x84] sm:$0xf]  ;;  %v1937_v43 = vld [vmem:[#allocation6 + $0x90] sm:$0xf0]  ;;  %v1944_v45 = vor.u32 %v2400_v39, %v1943_v37 }
  0x38   :  { %395 = vmatpush.bf16.msra.mxu0 %v1952_v29  ;;  %v1948_v46 = vor.u32 %v2398_v40, %v1945_v41  ;;  %v1919_v47 = vld [vmem:[#allocation6 + $0x60] sm:$0xf]  ;;  %v2395_v48 = vld [vmem:[#allocation6 + $0x6c] sm:$0xf0]  ;;  %v1927_v49 = vld [vmem:[#allocation6 + $0x68] sm:$0xf]  ;;  %v1940_v50 = vor.u32 %v2397_v42, %v1937_v43 }
  0x39   :  { %421 = vmatpush.bf16.msra.mxu2 %v1960_v33  ;;  %v2396_v51 = vld [vmem:[#allocation6 + $0x74] sm:$0xf0]  ;;  %v2394_v52 = vld [vmem:[#allocation6 + $0x6c] sm:$0xf]  ;;  %v1929_v53 = vld [vmem:[#allocation6 + $0x78] sm:$0xf0]  ;;  %v1920_v56 = vor.u32 %v2395_v48, %v1919_v47 }
  0x3a   :  { %434 = vmatpush.bf16.msra.mxu3 %v1964_v34  ;;  %408 = vmatpush.bf16.msra.mxu1 %v1956_v38  ;;  %v2393_v54 = vld [vmem:[#allocation6 + $0x64] sm:$0xf]  ;;  %v1921_v55 = vld [vmem:[#allocation6 + $0x70] sm:$0xf0]  ;;  %v1928_v57 = vor.u32 %v2396_v51, %v1927_v49  ;;  %v1932_v58 = vor.u32 %v2394_v52, %v1929_v53  ;;  %v1903_v59 = vld [vmem:[#allocation6 + $0x40] sm:$0xf] }
  0x3b   :  { %v2391_v60 = vld [vmem:[#allocation6 + $0x4c] sm:$0xf0]  ;;  %v1911_v61 = vld [vmem:[#allocation6 + $0x48] sm:$0xf]  ;;  %v1924_v62 = vor.u32 %v2393_v54, %v1921_v55  ;;  %v2392_v63 = vld [vmem:[#allocation6 + $0x54] sm:$0xf0] }
  0x3c   :  { %396 = vmatpush.bf16.msra.mxu0 %v1936_v44  ;;  %v2390_v0 = vld [vmem:[#allocation6 + $0x4c] sm:$0xf]  ;;  %v1913_v1 = vld [vmem:[#allocation6 + $0x58] sm:$0xf0]  ;;  %v2389_v2 = vld [vmem:[#allocation6 + $0x44] sm:$0xf]  ;;  %v1904_v4 = vor.u32 %v2391_v60, %v1903_v59  ;;  %v1912_v5 = vor.u32 %v2392_v63, %v1911_v61 }
  0x3d   :  { %422 = vmatpush.bf16.msra.mxu2 %v1944_v45  ;;  %v1905_v3 = vld [vmem:[#allocation6 + $0x50] sm:$0xf0]  ;;  %v1916_v6 = vor.u32 %v2390_v0, %v1913_v1  ;;  %v1887_v7 = vld [vmem:[#allocation6 + $0x20] sm:$0xf]  ;;  %v2387_v8 = vld [vmem:[#allocation6 + $0x2c] sm:$0xf0] }
  0x3e   :  { %435 = vmatpush.bf16.msra.mxu3 %v1948_v46  ;;  %409 = vmatpush.bf16.msra.mxu1 %v1940_v50  ;;  %v1895_v9 = vld [vmem:[#allocation6 + $0x28] sm:$0xf]  ;;  %v1908_v10 = vor.u32 %v2389_v2, %v1905_v3  ;;  %v2388_v11 = vld [vmem:[#allocation6 + $0x34] sm:$0xf0]  ;;  %v2386_v12 = vld [vmem:[#allocation6 + $0x2c] sm:$0xf]  ;;  %v1888_v16 = vor.u32 %v2387_v8, %v1887_v7 }
  0x3f   :  { %v1897_v13 = vld [vmem:[#allocation6 + $0x38] sm:$0xf0]  ;;  %v2385_v14 = vld [vmem:[#allocation6 + $0x24] sm:$0xf]  ;;  %v1889_v15 = vld [vmem:[#allocation6 + $0x30] sm:$0xf0]  ;;  %v1896_v17 = vor.u32 %v2388_v11, %v1895_v9 }
  0x40   :  { %397 = vmatpush.bf16.msra.mxu0 %v1920_v56  ;;  %v1900_v18 = vor.u32 %v2386_v12, %v1897_v13  ;;  %v1871_v19 = vld [vmem:[#allocation6] sm:$0xf]  ;;  %v2383_v20 = vld [vmem:[#allocation6 + $0xc] sm:$0xf0]  ;;  %v1879_v21 = vld [vmem:[#allocation6 + $0x8] sm:$0xf]  ;;  %v1892_v22 = vor.u32 %v2385_v14, %v1889_v15 }
  0x41   :  { %423 = vmatpush.bf16.msra.mxu2 %v1928_v57  ;;  %v2384_v23 = vld [vmem:[#allocation6 + $0x14] sm:$0xf0]  ;;  %v2382_v24 = vld [vmem:[#allocation6 + $0xc] sm:$0xf]  ;;  %v1881_v25 = vld [vmem:[#allocation6 + $0x18] sm:$0xf0]  ;;  %v1872_v28 = vor.u32 %v2383_v20, %v1871_v19 }
  0x42   :  { %436 = vmatpush.bf16.msra.mxu3 %v1932_v58  ;;  %410 = vmatpush.bf16.msra.mxu1 %v1924_v62  ;;  %v2381_v26 = vld [vmem:[#allocation6 + $0x4] sm:$0xf]  ;;  %v1873_v27 = vld [vmem:[#allocation6 + $0x10] sm:$0xf0]  ;;  %v1880_v29 = vor.u32 %v2384_v23, %v1879_v21  ;;  %v1884_v30 = vor.u32 %v2382_v24, %v1881_v25  ;;  %v2420_v32 = vld [vmem:[#allocation9 + $0x38] sm:$0xff]  ;;  %s3127_s27 = sld [smem:[#allocation28_spill]] }
  0x43   :  { %v1876_v31 = vor.u32 %v2381_v26, %v1873_v27  ;;  %v2428_v33 = vld [vmem:[#allocation9 + $0x78] sm:$0xff]  ;;  %v2419_v36 = vld [vmem:[#allocation9 + $0x30] sm:$0xff]  ;;  %v2418_v40 = vld [vmem:[#allocation9 + $0x28] sm:$0xff]  ;;  %vm784_vm1 = vcmask 1040384   ;;  %s1839_s3 = sshll.u32 %s3120_s16, 4  ;;  %s2846_s30 = smov [#allocation19]   ;;  %s1840_s3 = int_to_ptr.hbm [resolvable:$true] %s1839_s3 }
  0x44   :  { %398 = vmatpush.bf16.msra.mxu0 %v1904_v4  ;;  %v2970_v34 = vld [vmem:[#allocation3] sm:$0xf]  ;;  %v2427_v38 = vld [vmem:[#allocation9 + $0x70] sm:$0xff]  ;;  %v2426_v42 = vld [vmem:[#allocation9 + $0x68] sm:$0xff]  ;;  %s1848_s20 = sshll.u32 %s2846_s30, 4  ;;  %s1850_s2 = sshll.u32 %s3121_s17, 4  ;;  %s1849_s20 = int_to_ptr.vmem [resolvable:$true] %s1848_s20  ;;  %s1851_s2 = int_to_ptr.hbm [resolvable:$true] %s1850_s2 }
  0x45   :  { %424 = vmatpush.bf16.msra.mxu2 %v1912_v5  ;;  %v2436_v35 = vld [vmem:[#allocation9 + $0xb8] sm:$0xff]  ;;  %v2435_v39 = vld [vmem:[#allocation9 + $0xb0] sm:$0xff]  ;;  %v2434_v43 = vld [vmem:[#allocation9 + $0xa8] sm:$0xff] }
  0x46   :  { %437 = vmatpush.bf16.msra.mxu3 %v1916_v6  ;;  %411 = vmatpush.bf16.msra.mxu1 %v1908_v10  ;;  %v2444_v37 = vld [vmem:[#allocation9 + $0xf8] sm:$0xff]  ;;  %v2443_v41 = vld [vmem:[#allocation9 + $0xf0] sm:$0xff]  ;;  %v2417_v44 = vld [vmem:[#allocation9 + $0x20] sm:$0xff] }
  0x47   :  { %v2442_v45 = vld [vmem:[#allocation9 + $0xe8] sm:$0xff]  ;;  %v2425_v46 = vld [vmem:[#allocation9 + $0x60] sm:$0xff]  ;;  %v2416_v48 = vld [vmem:[#allocation9 + $0x18] sm:$0xff] }
  0x48   :  { %399 = vmatpush.bf16.msra.mxu0 %v1888_v16  ;;  %v2433_v47 = vld [vmem:[#allocation9 + $0xa0] sm:$0xff]  ;;  %v2424_v50 = vld [vmem:[#allocation9 + $0x58] sm:$0xff]  ;;  %v2415_v52 = vld [vmem:[#allocation9 + $0x10] sm:$0xff] }
  0x49   :  { %425 = vmatpush.bf16.msra.mxu2 %v1896_v17  ;;  %v2441_v49 = vld [vmem:[#allocation9 + $0xe0] sm:$0xff]  ;;  %v2432_v51 = vld [vmem:[#allocation9 + $0x98] sm:$0xff]  ;;  %v2423_v54 = vld [vmem:[#allocation9 + $0x50] sm:$0xff] }
  0x4a   :  { %438 = vmatpush.bf16.msra.mxu3 %v1900_v18  ;;  %412 = vmatpush.bf16.msra.mxu1 %v1892_v22  ;;  %v2440_v53 = vld [vmem:[#allocation9 + $0xd8] sm:$0xff]  ;;  %v2414_v55 = vld [vmem:[#allocation9 + $0x8] sm:$0xff]  ;;  %v2431_v57 = vld [vmem:[#allocation9 + $0x90] sm:$0xff] }
  0x4b   :  { %v2422_v56 = vld [vmem:[#allocation9 + $0x48] sm:$0xff]  ;;  %v2439_v58 = vld [vmem:[#allocation9 + $0xd0] sm:$0xff]  ;;  %v2413_v59 = vld [vmem:[#allocation9] sm:$0xff] }
  0x4c   :  { %400 = vmatpush.bf16.msra.mxu0 %v1872_v28  ;;  %v2421_v60 = vld [vmem:[#allocation9 + $0x40] sm:$0xff]  ;;  %v2430_v61 = vld [vmem:[#allocation9 + $0x88] sm:$0xff]  ;;  %v223_v1 = vld [vmem:[#allocation8] sm:$0xf] }
  0x4d   :  { %426 = vmatpush.bf16.msra.mxu2 %v1880_v29  ;;  %v2438_v62 = vld [vmem:[#allocation9 + $0xc8] sm:$0xff]  ;;  %v2429_v63 = vld [vmem:[#allocation9 + $0x80] sm:$0xff]  ;;  %v225_v2 = vperm.slane %v223_v1, 0  ;;  %v226_v3 = vperm.slane %v223_v1, 1  ;;  %v227_v9 = vperm.slane %v223_v1, 2  ;;  %v228_v10 = vperm.slane %v223_v1, 3 }
  0x4e   :  { %439 = vmatpush.bf16.msra.mxu3 %v1884_v30  ;;  %413 = vmatpush.bf16.msra.mxu1 %v1876_v31  ;;  %v2437_v0 = vld [vmem:[#allocation9 + $0xc0] sm:$0xff]  ;;  %v2843_v29 = vmov 8.0  }
  0x4f   :  { %401 = vmatmul.bf16.vlgmr.msra.gmra.mxu0 %v2970_v34  ;;  %v2534_v27 = vld [vmem:[#allocation11] ss:$0 sm:$0xff]  ;;  %2536 = vrcp.f32 %v2843_v29 }
  0x50   :  { %713 = vmatpush.bf16.msrb.mxu0 %v2420_v32  ;;  %427 = vmatmul.bf16.vlgmr.msra.gmra.mxu2 %v2970_v34 }
  0x51   :  { %440 = vmatmul.bf16.vlgmr.msra.gmra.mxu3 %v2970_v34  ;;  %414 = vmatmul.bf16.vlgmr.msra.gmra.mxu1 %v2970_v34 }
  0x52   :  { %726 = vmatpush.bf16.msrb.mxu1 %v2428_v33  ;;  %739 = vmatpush.bf16.msrb.mxu2 %v2436_v35 }
  0x53   :  { %752 = vmatpush.bf16.msrb.mxu3 %v2444_v37 }
  0x54   :  { %714 = vmatpush.bf16.msrb.mxu0 %v2419_v36 }
  0x55   :  { %v2537_v32 = vpop.eup %2536 }
  0x56   :  { %727 = vmatpush.bf16.msrb.mxu1 %v2427_v38  ;;  %740 = vmatpush.bf16.msrb.mxu2 %v2435_v39  ;;  %v773_v38 = vmul.f32 8.0, %v2537_v32  ;;  %vm777_vm0 = vweird.f32 %v2537_v32 }
  0x57   :  { %753 = vmatpush.bf16.msrb.mxu3 %v2443_v41 }
  0x58   :  { %715 = vmatpush.bf16.msrb.mxu0 %v2418_v40  ;;  %v774_v41 = vsub.f32 1.0, %v773_v38 }
  0x5a   :  { %728 = vmatpush.bf16.msrb.mxu1 %v2426_v42  ;;  %741 = vmatpush.bf16.msrb.mxu2 %v2434_v43 }
  0x5b   :  { %754 = vmatpush.bf16.msrb.mxu3 %v2442_v45 }
  0x5c   :  { %716 = vmatpush.bf16.msrb.mxu0 %v2417_v44 }
  0x5e   :  { %729 = vmatpush.bf16.msrb.mxu1 %v2425_v46  ;;  %742 = vmatpush.bf16.msrb.mxu2 %v2433_v47  ;;  %v775_v46 = vmul.f32 %v2537_v32, %v774_v41 }
  0x5f   :  { %755 = vmatpush.bf16.msrb.mxu3 %v2441_v49 }
  0x60   :  { %717 = vmatpush.bf16.msrb.mxu0 %v2416_v48  ;;  %v776_v49 = vadd.f32 %v2537_v32, %v775_v46  ;;  %v839_v46 = vld [vmem:[#allocation12 + $0x78] sm:$0xff] }
  0x62   :  { %730 = vmatpush.bf16.msrb.mxu1 %v2424_v50  ;;  %743 = vmatpush.bf16.msrb.mxu2 %v2432_v51 }
  0x63   :  { %756 = vmatpush.bf16.msrb.mxu3 %v2440_v53 }
  0x64   :  { %718 = vmatpush.bf16.msrb.mxu0 %v2415_v52  ;;  %v2976_v52 = vsel %vm777_vm0, %v2537_v32, %v776_v49 }
  0x66   :  { %731 = vmatpush.bf16.msrb.mxu1 %v2423_v54  ;;  %744 = vmatpush.bf16.msrb.mxu2 %v2431_v57  ;;  %v781_v54 = vstv %s3127_s27 }
  0x67   :  { %757 = vmatpush.bf16.msrb.mxu3 %v2439_v58 }
  0x68   :  { %719 = vmatpush.bf16.msrb.mxu0 %v2414_v55 }
  0x6a   :  { %732 = vmatpush.bf16.msrb.mxu1 %v2422_v56  ;;  %745 = vmatpush.bf16.msrb.mxu2 %v2430_v61 }
  0x6b   :  { %758 = vmatpush.bf16.msrb.mxu3 %v2438_v62 }
  0x6c   :  { %720 = vmatpush.bf16.msrb.mxu0 %v2413_v59 }
  0x6e   :  { %733 = vmatpush.bf16.msrb.mxu1 %v2421_v60  ;;  %746 = vmatpush.bf16.msrb.mxu2 %v2429_v63 }
  0x6f   :  { %759 = vmatpush.bf16.msrb.mxu3 %v2437_v0 }
  0xcc   :  { %v402_v4 = vpop.f32.mrf.mxu0 }
  0xcd   :  { %v403_v5 = vadd.f32 %v402_v4, %v225_v2  ;;  %v2844_v2 = vmov 0  }
  0xce   :  { %v415_v6 = vpop.f32.mrf.mxu1  ;;  %2532 = vset.pattern.permute.xlu1 %v2844_v2  ;;  %2533 = vset.pattern.permute.xlu2 %v2844_v2 }
  0xcf   :  { %v445_v7 = vmax.f32 %v403_v5, 0.0  ;;  %v416_v8 = vadd.f32 %v415_v6, %v226_v3 }
  0xd1   :  { %v449_v11 = vpack.c.bf16 %v445_v7, %v445_v7  ;;  %v446_v12 = vmax.f32 %v416_v8, 0.0 }
  0xd3   :  { %v450_v13 = vpack.c.bf16 %v446_v12, %v446_v12  ;;  %v428_v14 = vpop.f32.mrf.mxu2  ;;  %721 = vmatmul.bf16.vlgmr.msrb.gmra.mxu0 %v449_v11 }
  0xd4   :  { %v441_v15 = vpop.f32.mrf.mxu3  ;;  %v429_v16 = vadd.f32 %v428_v14, %v227_v9  ;;  %v404_v18 = vpop.f32.mrf.mxu0 }
  0xd5   :  { %v442_v17 = vadd.f32 %v441_v15, %v228_v10  ;;  %734 = vmatmul.bf16.vlgmr.msrb.gmra.mxu1 %v450_v13  ;;  %v849_v18 = vld [vmem:[#allocation12 + $0xb4] sm:$0xff] }
  0xd6   :  { %v447_v19 = vmax.f32 %v429_v16, 0.0  ;;  %v417_v21 = vpop.f32.mrf.mxu1 }
  0xd7   :  { %v448_v20 = vmax.f32 %v442_v17, 0.0  ;;  %v847_v17 = vld [vmem:[#allocation12 + $0xa8] sm:$0xff]  ;;  %v843_v21 = vld [vmem:[#allocation12 + $0x90] sm:$0xff] }
  0xd8   :  { %v451_v22 = vpack.c.bf16 %v447_v19, %v447_v19  ;;  %v848_v19 = vld [vmem:[#allocation12 + $0xb0] sm:$0xf]  ;;  %v888_v38 = vunpack.c.h.bf16 %v843_v21 }
  0xd9   :  { %v452_v23 = vpack.c.bf16 %v448_v20, %v448_v20  ;;  %v850_v20 = vld [vmem:[#allocation12 + $0xbc] sm:$0xf]  ;;  %v895_v29 = vunpack.c.l.bf16 %v848_v19 }
  0xda   :  { %747 = vmatmul.bf16.vlgmr.msrb.gmra.mxu2 %v451_v22  ;;  %v845_v22 = vld [vmem:[#allocation12 + $0x9c] sm:$0xff]  ;;  %v898_v32 = vunpack.c.l.bf16 %v850_v20 }
  0xdb   :  { %760 = vmatmul.bf16.vlgmr.msrb.gmra.mxu3 %v452_v23  ;;  %v430_v24 = vpop.f32.mrf.mxu2  ;;  %v844_v23 = vld [vmem:[#allocation12 + $0x98] sm:$0xf]  ;;  %v834_v20 = vld [vmem:[#allocation12 + $0x5c] sm:$0xf] }
  0xdc   :  { %v443_v25 = vpop.f32.mrf.mxu3  ;;  %v893_v24 = vunpack.c.l.bf16 %v847_v17 }
  0xdd   :  { %v896_v25 = vunpack.c.l.bf16 %v849_v18 }
 0x150   :  { %v722_v26 = vpop.f32.mrf.mxu0 }
 0x151   :  { %v723_v30 = vadd.f32 %v2534_v27, %v722_v26  ;;  %v846_v26 = vld [vmem:[#allocation12 + $0xa4] sm:$0xf] }
 0x152   :  { %v735_v28 = vpop.f32.mrf.mxu1  ;;  %v841_v27 = vld [vmem:[#allocation12 + $0x84] sm:$0xff] }
 0x153   :  { %v736_v33 = vadd.f32 %v735_v28, %v723_v30  ;;  %v894_v28 = vunpack.c.h.bf16 %v847_v17 }
 0x158   :  { %v724_v31 = vpop.f32.mrf.mxu0 }
 0x159   :  { %v897_v31 = vunpack.c.h.bf16 %v849_v18 }
 0x15a   :  { %v737_v35 = vpop.f32.mrf.mxu1 }
 0x15d   :  { %v748_v36 = vpop.f32.mrf.mxu2 }
 0x15e   :  { %v761_v37 = vpop.f32.mrf.mxu3  ;;  %v749_v39 = vadd.f32 %v748_v36, %v736_v33  ;;  %v887_v33 = vunpack.c.l.bf16 %v843_v21  ;;  %v890_v36 = vunpack.c.l.bf16 %v845_v22 }
 0x160   :  { %v762_v40 = vadd.f32 %v761_v37, %v749_v39  ;;  %v891_v37 = vunpack.c.h.bf16 %v845_v22  ;;  %v889_v39 = vunpack.c.l.bf16 %v844_v23 }
 0x162   :  { %v765_v42 = vand.u32 2147483647, %v762_v40  ;;  %v842_v40 = vld [vmem:[#allocation12 + $0x8c] sm:$0xf] }
 0x164   :  { %v766_v43 = vrot.slane %v765_v42, 4 }
 0x165   :  { %v750_v44 = vpop.f32.mrf.mxu2 }
 0x166   :  { %v763_v45 = vpop.f32.mrf.mxu3  ;;  %v767_v47 = vadd.f32 %v766_v43, %v765_v42  ;;  %v892_v42 = vunpack.c.l.bf16 %v846_v26  ;;  %v884_v43 = vunpack.c.l.bf16 %v841_v27 }
 0x168   :  { %v768_v48 = vrot.slane %v767_v47, 2 }
 0x16a   :  { %v769_v50 = vadd.f32 %v768_v48, %v767_v47 }
 0x16c   :  { %v770_v51 = vrot.slane %v769_v50, 1 }
 0x16e   :  { %v771_v53 = vadd.f32 %v770_v51, %v769_v50  ;;  %v840_v51 = vld [vmem:[#allocation12 + $0x80] sm:$0xf] }
 0x170   :  { %v779_v55 = vmul.f32 %v2976_v52, %v771_v53 }
 0x172   :  { %vm782_vm2 = vcmp.lt.f32.partialorder %v779_v55, %v781_v54  ;;  %v885_v54 = vunpack.c.h.bf16 %v841_v27 }
 0x173   :  { %v783_v56 = vsel %vm782_vm2, 0.0, %v779_v55 }
 0x174   :  { %787 = vxpose.xlu0.b32.start.end [1/1] (short) %v783_v56, 128  ;;  %v785_v57 = vsel %vm784_vm1, %v779_v55, %v783_v56  ;;  %v886_v55 = vunpack.c.l.bf16 %v842_v40  ;;  %v837_v56 = vld [vmem:[#allocation12 + $0x6c] sm:$0xff] }
 0x175   :  { %786 = vst [vmem:[#allocation18] sm:$0x3] %v785_v57 }
 0x1db   :  { %2531 = vset.pattern.permute.xlu0 %v2844_v2 }
 0x218   :  { %v803_v58 = vpop.trf.xlu0 }
 0x220   :  { %v804_v59 = vpop.trf.xlu0 }
 0x228   :  { %v805_v60 = vpop.trf.xlu0 }
 0x230   :  { %v806_v61 = vpop.trf.xlu0 }
 0x238   :  { %v807_v62 = vpop.trf.xlu0 }
 0x240   :  { %v808_v63 = vpop.trf.xlu0 }
 0x248   :  { %v809_v0 = vpop.trf.xlu0 }
 0x250   :  { %v810_v1 = vpop.trf.xlu0 }
 0x258   :  { %v811_v3 = vpop.trf.xlu0 }
 0x260   :  { %v812_v4 = vpop.trf.xlu0 }
 0x268   :  { %v813_v5 = vpop.trf.xlu0 }
 0x270   :  { %v814_v6 = vpop.trf.xlu0 }
 0x278   :  { %v815_v7 = vpop.trf.xlu0 }
 0x279   :  { %961 = vperm.xlu1 %2532, %v815_v7   ;;  %v836_v7 = vld [vmem:[#allocation12 + $0x68] sm:$0xf] }
 0x280   :  { %v816_v8 = vpop.trf.xlu0 }
 0x281   :  { %956 = vperm.xlu1 %2532, %v814_v6   ;;  %966 = vperm.xlu2 %2533, %v816_v8   ;;  %v878_v6 = vunpack.c.l.bf16 %v837_v56 }
 0x288   :  { %v817_v9 = vpop.trf.xlu0 }
 0x289   :  { %946 = vperm.xlu1 %2532, %v812_v4   ;;  %951 = vperm.xlu2 %2533, %v813_v5   ;;  %v883_v4 = vunpack.c.l.bf16 %v840_v51  ;;  %v835_v5 = vld [vmem:[#allocation12 + $0x60] sm:$0xff]  ;;  %v828_v51 = vld [vmem:[#allocation12 + $0x38] sm:$0xf] }
 0x28a   :  { %971 = vperm.xlu0 %2531, %v817_v9   ;;  %v879_v9 = vunpack.c.h.bf16 %v837_v56 }
 0x290   :  { %v818_v10 = vpop.trf.xlu0 }
 0x291   :  { %941 = vperm.xlu2 %2533, %v811_v3   ;;  %976 = vperm.xlu1 %2532, %v818_v10  }
 0x299   :  { %931 = vperm.xlu2 %2533, %v809_v0   ;;  %936 = vperm.xlu1 %2532, %v810_v1   ;;  %v881_v0 = vunpack.c.l.bf16 %v839_v46  ;;  %v882_v1 = vunpack.c.h.bf16 %v839_v46 }
 0x2a1   :  { %921 = vperm.xlu2 %2533, %v807_v62   ;;  %926 = vperm.xlu1 %2532, %v808_v63  }
 0x2a9   :  { %911 = vperm.xlu2 %2533, %v805_v60   ;;  %916 = vperm.xlu1 %2532, %v806_v61   ;;  %v838_v60 = vld [vmem:[#allocation12 + $0x74] sm:$0xf] }
 0x2aa   :  { %v880_v10 = vunpack.c.l.bf16 %v838_v60 }
 0x2b1   :  { %901 = vperm.xlu2 %2533, %v803_v58   ;;  %906 = vperm.xlu1 %2532, %v804_v59  }
 0x2db   :  { %v967_v11 = vpop.permute.xlu2 %966 }
 0x2dc   :  { %v1018_v63 = vmul.f32 %v967_v11, %v890_v36  ;;  %v1019_v2 = vmul.f32 %v967_v11, %v891_v37  ;;  %v1020_v3 = vmul.f32 %v967_v11, %v892_v42  ;;  %v874_v36 = vunpack.c.l.bf16 %v834_v20 }
 0x2e3   :  { %v2982_v13 = vpop.permute.xlu2 %951 }
 0x2e4   :  { %v1009_v23 = vmul.f32 %v2982_v13, %v881_v0  ;;  %v1010_v27 = vmul.f32 %v2982_v13, %v882_v1 }
 0x2eb   :  { %v962_v12 = vpop.permute.xlu1 %961  ;;  %v2986_v15 = vpop.permute.xlu2 %941 }
 0x2ec   :  { %v1015_v53 = vmul.f32 %v962_v12, %v887_v33  ;;  %v1016_v58 = vmul.f32 %v962_v12, %v888_v38  ;;  %v1017_v59 = vmul.f32 %v962_v12, %v889_v39  ;;  %v833_v12 = vld [vmem:[#allocation12 + $0x54] sm:$0xff]  ;;  %v829_v38 = vld [vmem:[#allocation12 + $0x3c] sm:$0xff] }
 0x2ed   :  { %v873_v33 = vunpack.c.h.bf16 %v833_v12 }
 0x2ee   :  { %v1045_v17 = vpack.c.bf16 %v1018_v63, %v1015_v53  ;;  %v1046_v22 = vpack.c.bf16 %v1019_v2, %v1016_v58  ;;  %v1047_v11 = vpack.c.bf16 %v1020_v3, %v1017_v59  ;;  %v823_v53 = vld [vmem:[#allocation12 + $0x18] sm:$0xff]  ;;  %v865_v3 = vunpack.c.l.bf16 %v828_v51 }
 0x2f3   :  { %v2984_v14 = vpop.permute.xlu1 %956  ;;  %v2990_v35 = vpop.permute.xlu2 %931 }
 0x2f4   :  { %v1012_v8 = vmul.f32 %v2984_v14, %v884_v43  ;;  %v1013_v18 = vmul.f32 %v2984_v14, %v885_v54  ;;  %v1014_v19 = vmul.f32 %v2984_v14, %v886_v55  ;;  %v832_v14 = vld [vmem:[#allocation12 + $0x50] sm:$0xf]  ;;  %v830_v43 = vld [vmem:[#allocation12 + $0x44] sm:$0xf]  ;;  %v867_v54 = vunpack.c.h.bf16 %v829_v38 }
 0x2f5   :  { %v868_v55 = vunpack.c.l.bf16 %v830_v43 }
 0x2f6   :  { %v1042_v37 = vpack.c.bf16 %v1012_v8, %v1009_v23 }
 0x2fb   :  { %v2988_v16 = vpop.permute.xlu1 %946  ;;  %v2996_v26 = vpop.permute.xlu2 %921 }
 0x2fc   :  { %v972_v30 = vpop.permute.xlu0 %971  ;;  %v1007_v39 = vmul.f32 %v2988_v16, %v879_v9  ;;  %v1008_v40 = vmul.f32 %v2988_v16, %v880_v10 }
 0x2fd   :  { %v1021_v44 = vmul.f32 %v972_v30, %v893_v24  ;;  %v1022_v47 = vmul.f32 %v972_v30, %v894_v28  ;;  %v1023_v48 = vmul.f32 %v972_v30, %v895_v29  ;;  %v875_v24 = vunpack.c.l.bf16 %v835_v5  ;;  %v831_v30 = vld [vmem:[#allocation12 + $0x48] sm:$0xff] }
 0x2fe   :  { %v1011_v28 = vmul.f32 %v2982_v13, %v883_v4  ;;  %v877_v29 = vunpack.c.l.bf16 %v836_v7  ;;  %v857_v4 = vunpack.c.l.bf16 %v823_v53  ;;  %v858_v7 = vunpack.c.h.bf16 %v823_v53 }
 0x2ff   :  { %v1003_v13 = vmul.f32 %v2986_v15, %v875_v24  ;;  %v993_v24 = vmul.f32 %v2996_v26, %v865_v3 }
 0x300   :  { %v1044_v42 = vpack.c.bf16 %v1014_v19, %v1011_v28 }
 0x303   :  { %v977_v41 = vpop.permute.xlu1 %976  ;;  %v912_v9 = vpop.permute.xlu2 %911 }
 0x304   :  { %v1024_v45 = vmul.f32 %v977_v41, %v896_v25  ;;  %v1025_v49 = vmul.f32 %v977_v41, %v897_v31  ;;  %v1026_v50 = vmul.f32 %v977_v41, %v898_v32  ;;  %v876_v25 = vunpack.c.h.bf16 %v835_v5  ;;  %v825_v5 = vld [vmem:[#allocation12 + $0x24] sm:$0xff] }
 0x305   :  { %v872_v31 = vunpack.c.l.bf16 %v833_v12  ;;  %v1006_v32 = vmul.f32 %v2988_v16, %v878_v6  ;;  %v1043_v41 = vpack.c.bf16 %v1013_v18, %v1010_v27  ;;  %v826_v6 = vld [vmem:[#allocation12 + $0x2c] sm:$0xf]  ;;  %v985_v27 = vmul.f32 %v912_v9, %v857_v4  ;;  %v2474_v4 = vld [vmem:[#allocation14 + $0xe4] sm:$0xf0] }
 0x306   :  { %v1048_v57 = vpack.c.bf16 %v1024_v45, %v1021_v44  ;;  %v1049_v61 = vpack.c.bf16 %v1025_v49, %v1022_v47  ;;  %v1050_v62 = vpack.c.bf16 %v1026_v50, %v1023_v48  ;;  %v869_v44 = vunpack.c.l.bf16 %v831_v30  ;;  %v827_v49 = vld [vmem:[#allocation12 + $0x30] sm:$0xff] }
 0x307   :  { %v870_v45 = vunpack.c.h.bf16 %v831_v30  ;;  %v1004_v46 = vmul.f32 %v2986_v15, %v876_v25  ;;  %v1005_v47 = vmul.f32 %v2986_v15, %v877_v29  ;;  %v871_v48 = vunpack.c.l.bf16 %v832_v14 }
 0x308   :  { %1059 = vmatpush.bf16.msra.mxu0 %v1048_v57  ;;  %1072 = vmatpush.bf16.msra.mxu1 %v1049_v61  ;;  %v866_v50 = vunpack.c.l.bf16 %v829_v38  ;;  %v1039_v56 = vpack.c.bf16 %v1006_v32, %v1003_v13  ;;  %v824_v57 = vld [vmem:[#allocation12 + $0x20] sm:$0xf]  ;;  %v997_v63 = vmul.f32 %v2990_v35, %v869_v44  ;;  %v863_v15 = vunpack.c.l.bf16 %v827_v49  ;;  %v820_v38 = vld [vmem:[#allocation12 + $0x8] sm:$0xf] }
 0x309   :  { %1085 = vmatpush.bf16.msra.mxu2 %v1050_v62  ;;  %v1040_v61 = vpack.c.bf16 %v1007_v39, %v1004_v46  ;;  %v1041_v62 = vpack.c.bf16 %v1008_v40, %v1005_v47  ;;  %v864_v0 = vunpack.c.h.bf16 %v827_v49  ;;  %v998_v1 = vmul.f32 %v2990_v35, %v870_v45  ;;  %v819_v32 = vld [vmem:[#allocation12] sm:$0xff]  ;;  %v821_v39 = vld [vmem:[#allocation12 + $0xc] sm:$0xff]  ;;  %v822_v40 = vld [vmem:[#allocation12 + $0x14] sm:$0xf] }
 0x30a   :  { %v999_v2 = vmul.f32 %v2990_v35, %v871_v48  ;;  %v859_v8 = vunpack.c.l.bf16 %v824_v57  ;;  %v861_v35 = vunpack.c.h.bf16 %v825_v5  ;;  %v986_v28 = vmul.f32 %v912_v9, %v858_v7  ;;  %v2456_v7 = vld [vmem:[#allocation14 + $0x54] sm:$0xf0] }
 0x30b   :  { %v937_v21 = vpop.permute.xlu1 %936  ;;  %v992_v23 = vmul.f32 %v2996_v26, %v864_v0  ;;  %v851_v43 = vunpack.c.l.bf16 %v819_v32  ;;  %v852_v13 = vunpack.c.h.bf16 %v819_v32  ;;  %v853_v44 = vunpack.c.l.bf16 %v820_v38  ;;  %v902_v45 = vpop.permute.xlu2 %901  ;;  %v2175_v0 = vld [vmem:[#allocation14 + $0x60] sm:$0xf]  ;;  %v2492_v38 = vld [vmem:[#allocation14 + $0x174] sm:$0xf0] }
 0x30c   :  { %1060 = vmatpush.bf16.msra.mxu0 %v1045_v17  ;;  %1073 = vmatpush.bf16.msra.mxu1 %v1046_v22  ;;  %v1000_v16 = vmul.f32 %v937_v21, %v872_v31  ;;  %v1001_v58 = vmul.f32 %v937_v21, %v873_v33  ;;  %v1002_v59 = vmul.f32 %v937_v21, %v874_v36  ;;  %v860_v22 = vunpack.c.l.bf16 %v825_v5 }
 0x30d   :  { %1086 = vmatpush.bf16.msra.mxu2 %v1047_v11  ;;  %v991_v21 = vmul.f32 %v2996_v26, %v863_v15  ;;  %v862_v11 = vunpack.c.l.bf16 %v826_v6  ;;  %v987_v14 = vmul.f32 %v912_v9, %v859_v8  ;;  %v854_v46 = vunpack.c.l.bf16 %v821_v39  ;;  %v2167_v6 = vld [vmem:[#allocation14 + $0x50] sm:$0xf]  ;;  %v2472_v9 = vld [vmem:[#allocation14 + $0xd4] sm:$0xf0] }
 0x30e   :  { %v1036_v12 = vpack.c.bf16 %v1000_v16, %v997_v63  ;;  %v1037_v19 = vpack.c.bf16 %v1001_v58, %v998_v1  ;;  %v1038_v20 = vpack.c.bf16 %v1002_v59, %v999_v2  ;;  %v855_v47 = vunpack.c.h.bf16 %v821_v39  ;;  %v2183_v59 = vld [vmem:[#allocation14 + $0x70] sm:$0xf]  ;;  %v2476_v63 = vld [vmem:[#allocation14 + $0xf4] sm:$0xf0]  ;;  %v2458_v1 = vld [vmem:[#allocation14 + $0x64] sm:$0xf0] }
 0x30f   :  { %v856_v48 = vunpack.c.l.bf16 %v822_v40  ;;  %v979_v49 = vmul.f32 %v902_v45, %v851_v43  ;;  %v981_v53 = vmul.f32 %v902_v45, %v853_v44  ;;  %v2239_v2 = vld [vmem:[#allocation14 + $0xe0] sm:$0xf]  ;;  %v2176_v3 = vor.u32 %v2458_v1, %v2175_v0  ;;  %v2231_v8 = vld [vmem:[#allocation14 + $0xd0] sm:$0xf]  ;;  %v2466_v43 = vld [vmem:[#allocation14 + $0xa4] sm:$0xf0] }
 0x310   :  { %1061 = vmatpush.bf16.msra.mxu0 %v1042_v37  ;;  %1074 = vmatpush.bf16.msra.mxu1 %v1043_v41  ;;  %v2240_v5 = vor.u32 %v2474_v4, %v2239_v2  ;;  %v2143_v40 = vld [vmem:[#allocation14 + $0x20] sm:$0xf]  ;;  %v2169_v44 = vld [vmem:[#allocation14 + $0x58] sm:$0xf0]  ;;  %v2295_v1 = vld [vmem:[#allocation14 + $0x150] sm:$0xf] }
 0x311   :  { %1087 = vmatpush.bf16.msra.mxu2 %v1044_v42  ;;  %v2488_v2 = vld [vmem:[#allocation14 + $0x154] sm:$0xf0]  ;;  %v2127_v4 = vld [vmem:[#allocation14] sm:$0xf] }
 0x313   :  { %v927_v60 = vpop.permute.xlu1 %926 }
 0x314   :  { %1062 = vmatpush.bf16.msra.mxu0 %v1039_v56  ;;  %1075 = vmatpush.bf16.msra.mxu1 %v1040_v61  ;;  %v994_v10 = vmul.f32 %v927_v60, %v866_v50  ;;  %v995_v17 = vmul.f32 %v927_v60, %v867_v54  ;;  %v996_v18 = vmul.f32 %v927_v60, %v868_v55  ;;  %v2460_v60 = vld [vmem:[#allocation14 + $0x74] sm:$0xf0]  ;;  %v2247_v61 = vld [vmem:[#allocation14 + $0xf0] sm:$0xf] }
 0x315   :  { %1088 = vmatpush.bf16.msra.mxu2 %v1041_v62  ;;  %v980_v50 = vmul.f32 %v902_v45, %v852_v13  ;;  %v2184_v62 = vor.u32 %v2460_v60, %v2183_v59  ;;  %v2248_v15 = vor.u32 %v2476_v63, %v2247_v61  ;;  %v2455_v13 = vld [vmem:[#allocation14 + $0x54] sm:$0xf]  ;;  %v2453_v59 = vld [vmem:[#allocation14 + $0x44] sm:$0xf]  ;;  %v2161_v60 = vld [vmem:[#allocation14 + $0x48] sm:$0xf0] }
 0x316   :  { %v1033_v25 = vpack.c.bf16 %v994_v10, %v991_v21  ;;  %v1034_v30 = vpack.c.bf16 %v995_v17, %v992_v23  ;;  %v1035_v31 = vpack.c.bf16 %v996_v18, %v993_v24  ;;  %v2232_v10 = vor.u32 %v2472_v9, %v2231_v8  ;;  %v2454_v17 = vld [vmem:[#allocation14 + $0x44] sm:$0xf0]  ;;  %v2223_v18 = vld [vmem:[#allocation14 + $0xc0] sm:$0xf]  ;;  %v2459_v21 = vld [vmem:[#allocation14 + $0x74] sm:$0xf] }
 0x317   :  { %1513 = vmatpush.bf16.msra.mxu3 %v2184_v62  ;;  %v3018_v23 = vld [vmem:[%s3111_s7] sm:$0x7]  ;;  %v2151_v24 = vld [vmem:[#allocation14 + $0x30] sm:$0xf]  ;;  %v2164_v63 = vor.u32 %v2453_v59, %v2161_v60 }
 0x318   :  { %1063 = vmatpush.bf16.msra.mxu0 %v1036_v12  ;;  %1076 = vmatpush.bf16.msra.mxu1 %v1037_v19  ;;  %v2159_v12 = vld [vmem:[#allocation14 + $0x40] sm:$0xf]  ;;  %v1055_v61 = vperm.slane %v3018_v23, 2 }
 0x319   :  { %1089 = vmatpush.bf16.msra.mxu2 %v1038_v20  ;;  %v2160_v19 = vor.u32 %v2454_v17, %v2159_v12  ;;  %v2470_v20 = vld [vmem:[#allocation14 + $0xc4] sm:$0xf0]  ;;  %v2451_v12 = vld [vmem:[#allocation14 + $0x34] sm:$0xf] }
 0x31b   :  { %v917_v29 = vpop.permute.xlu1 %916  ;;  %1514 = vmatpush.bf16.msra.mxu3 %v2176_v3  ;;  %v2296_v3 = vor.u32 %v2488_v2, %v2295_v1 }
 0x31c   :  { %v988_v33 = vmul.f32 %v917_v29, %v860_v22  ;;  %v989_v36 = vmul.f32 %v917_v29, %v861_v35  ;;  %v990_v37 = vmul.f32 %v917_v29, %v862_v11  ;;  %1064 = vmatpush.bf16.msra.mxu0 %v1033_v25  ;;  %1077 = vmatpush.bf16.msra.mxu1 %v1034_v30  ;;  %v2185_v22 = vld [vmem:[#allocation14 + $0x78] sm:$0xf0]  ;;  %v2452_v25 = vld [vmem:[#allocation14 + $0x34] sm:$0xf0]  ;;  %v2457_v30 = vld [vmem:[#allocation14 + $0x64] sm:$0xf] }
 0x31d   :  { %1090 = vmatpush.bf16.msra.mxu2 %v1035_v31  ;;  %v2224_v35 = vor.u32 %v2470_v20, %v2223_v18  ;;  %v2188_v11 = vor.u32 %v2459_v21, %v2185_v22  ;;  %v2468_v29 = vld [vmem:[#allocation14 + $0xb4] sm:$0xf0]  ;;  %v2177_v31 = vld [vmem:[#allocation14 + $0x68] sm:$0xf0]  ;;  %v2475_v20 = vld [vmem:[#allocation14 + $0xf4] sm:$0xf] }
 0x31e   :  { %v1030_v26 = vpack.c.bf16 %v988_v33, %v985_v27  ;;  %v1031_v41 = vpack.c.bf16 %v989_v36, %v986_v28  ;;  %v1032_v42 = vpack.c.bf16 %v990_v37, %v987_v14  ;;  %v2215_v27 = vld [vmem:[#allocation14 + $0xb0] sm:$0xf]  ;;  %v2152_v28 = vor.u32 %v2452_v25, %v2151_v24  ;;  %v2249_v21 = vld [vmem:[#allocation14 + $0xf8] sm:$0xf0]  ;;  %v2491_v25 = vld [vmem:[#allocation14 + $0x174] sm:$0xf] }
 0x31f   :  { %v2216_v14 = vor.u32 %v2468_v29, %v2215_v27  ;;  %v2180_v32 = vor.u32 %v2457_v30, %v2177_v31  ;;  %v1053_v33 = vperm.slane %v3018_v23, 0  ;;  %v1054_v36 = vperm.slane %v3018_v23, 1  ;;  %v2311_v37 = vld [vmem:[#allocation14 + $0x170] sm:$0xf]  ;;  %v2313_v27 = vld [vmem:[#allocation14 + $0x178] sm:$0xf0] }
 0x320   :  { %1065 = vmatpush.bf16.msra.mxu0 %v1030_v26  ;;  %1078 = vmatpush.bf16.msra.mxu1 %v1031_v41  ;;  %v2312_v39 = vor.u32 %v2492_v38, %v2311_v37  ;;  %v2450_v26 = vld [vmem:[#allocation14 + $0x24] sm:$0xf0]  ;;  %v2207_v41 = vld [vmem:[#allocation14 + $0xa0] sm:$0xf] }
 0x321   :  { %1091 = vmatpush.bf16.msra.mxu2 %v1032_v42  ;;  %v2144_v42 = vor.u32 %v2450_v26, %v2143_v40  ;;  %v2208_v45 = vor.u32 %v2466_v43, %v2207_v41  ;;  %v2449_v40 = vld [vmem:[#allocation14 + $0x24] sm:$0xf]  ;;  %v2145_v26 = vld [vmem:[#allocation14 + $0x28] sm:$0xf0] }
 0x323   :  { %v907_v51 = vpop.permute.xlu1 %906 }
 0x324   :  { %v982_v16 = vmul.f32 %v907_v51, %v854_v46  ;;  %v983_v54 = vmul.f32 %v907_v51, %v855_v47  ;;  %v984_v55 = vmul.f32 %v907_v51, %v856_v48  ;;  %v2172_v46 = vor.u32 %v2455_v13, %v2169_v44  ;;  %v2303_v47 = vld [vmem:[#allocation14 + $0x160] sm:$0xf]  ;;  %v2490_v48 = vld [vmem:[#allocation14 + $0x164] sm:$0xf0]  ;;  %v2473_v44 = vld [vmem:[#allocation14 + $0xe4] sm:$0xf] }
 0x325   :  { %v2304_v51 = vor.u32 %v2490_v48, %v2303_v47  ;;  %v2148_v13 = vor.u32 %v2449_v40, %v2145_v26  ;;  %v2289_v40 = vld [vmem:[#allocation14 + $0x148] sm:$0xf0]  ;;  %v2263_v26 = vld [vmem:[#allocation14 + $0x110] sm:$0xf] }
 0x326   :  { %v1027_v56 = vpack.c.bf16 %v982_v16, %v979_v49  ;;  %v1028_v57 = vpack.c.bf16 %v983_v54, %v980_v50  ;;  %v1029_v58 = vpack.c.bf16 %v984_v55, %v981_v53  ;;  %v2135_v53 = vld [vmem:[#allocation14 + $0x10] sm:$0xf]  ;;  %v2448_v16 = vld [vmem:[#allocation14 + $0x14] sm:$0xf0] }
 0x327   :  { %v2199_v54 = vld [vmem:[#allocation14 + $0x90] sm:$0xf] }
 0x328   :  { %1066 = vmatpush.bf16.msra.mxu0 %v1027_v56  ;;  %1079 = vmatpush.bf16.msra.mxu1 %v1028_v57  ;;  %v2136_v57 = vor.u32 %v2448_v16, %v2135_v53 }
 0x329   :  { %1092 = vmatpush.bf16.msra.mxu2 %v1029_v58  ;;  %v2464_v58 = vld [vmem:[#allocation14 + $0x94] sm:$0xf0] }
 0x32a   :  { %v2200_v62 = vor.u32 %v2464_v58, %v2199_v54 }
 0x32b   :  { %1067 = vmatmul.bf16.vlgmr.msra.gmra.mxu0 %v2970_v34  ;;  %1080 = vmatmul.bf16.vlgmr.msra.gmra.mxu1 %v2970_v34 }
 0x32c   :  { %1093 = vmatmul.bf16.vlgmr.msra.gmra.mxu2 %v2970_v34  ;;  %1526 = vmatpush.bf16.msrb.mxu0 %v2248_v15  ;;  %v2168_v34 = vor.u32 %v2456_v7, %v2167_v6  ;;  %v2191_v6 = vld [vmem:[#allocation14 + $0x80] sm:$0xf] }
 0x32d   :  { %1552 = vmatpush.bf16.msrb.mxu2 %v2188_v11  ;;  %1539 = vmatpush.bf16.msrb.mxu1 %v2312_v39 }
 0x32e   :  { %1515 = vmatpush.bf16.msra.mxu3 %v2168_v34 }
 0x330   :  { %1527 = vmatpush.bf16.msrb.mxu0 %v2240_v5  ;;  %v2446_v5 = vld [vmem:[#allocation14 + $0x4] sm:$0xf0] }
 0x331   :  { %1553 = vmatpush.bf16.msrb.mxu2 %v2180_v32  ;;  %1540 = vmatpush.bf16.msrb.mxu1 %v2304_v51  ;;  %v2128_v17 = vor.u32 %v2446_v5, %v2127_v4  ;;  %v2287_v32 = vld [vmem:[#allocation14 + $0x140] sm:$0xf]  ;;  %v2305_v51 = vld [vmem:[#allocation14 + $0x168] sm:$0xf0]  ;;  %v2471_v5 = vld [vmem:[#allocation14 + $0xd4] sm:$0xf] }
 0x332   :  { %1516 = vmatpush.bf16.msra.mxu3 %v2160_v19  ;;  %v2153_v19 = vld [vmem:[#allocation14 + $0x38] sm:$0xf0] }
 0x333   :  { %v2156_v31 = vor.u32 %v2451_v12, %v2153_v19  ;;  %v2487_v12 = vld [vmem:[#allocation14 + $0x154] sm:$0xf] }
 0x334   :  { %1528 = vmatpush.bf16.msrb.mxu0 %v2232_v10  ;;  %v2462_v10 = vld [vmem:[#allocation14 + $0x84] sm:$0xf0] }
 0x335   :  { %1554 = vmatpush.bf16.msrb.mxu2 %v2172_v46  ;;  %1541 = vmatpush.bf16.msrb.mxu1 %v2296_v3  ;;  %v2192_v18 = vor.u32 %v2462_v10, %v2191_v6  ;;  %v2233_v6 = vld [vmem:[#allocation14 + $0xd8] sm:$0xf0] }
 0x336   :  { %1517 = vmatpush.bf16.msra.mxu3 %v2152_v28 }
 0x338   :  { %1529 = vmatpush.bf16.msrb.mxu0 %v2224_v35 }
 0x339   :  { %1555 = vmatpush.bf16.msrb.mxu2 %v2164_v63  ;;  %v2137_v63 = vld [vmem:[#allocation14 + $0x18] sm:$0xf0] }
 0x33a   :  { %1518 = vmatpush.bf16.msra.mxu3 %v2144_v42  ;;  %v2316_v42 = vor.u32 %v2491_v25, %v2313_v27  ;;  %v2445_v27 = vld [vmem:[#allocation14 + $0x4] sm:$0xf] }
 0x33c   :  { %1530 = vmatpush.bf16.msrb.mxu0 %v2216_v14  ;;  %v2252_v14 = vor.u32 %v2475_v20, %v2249_v21  ;;  %v2236_v20 = vor.u32 %v2471_v5, %v2233_v6  ;;  %v2481_v5 = vld [vmem:[#allocation14 + $0x124] sm:$0xf]  ;;  %v2273_v6 = vld [vmem:[#allocation14 + $0x128] sm:$0xf0] }
 0x33d   :  { %1556 = vmatpush.bf16.msrb.mxu2 %v2156_v31 }
 0x33e   :  { %1519 = vmatpush.bf16.msra.mxu3 %v2136_v57  ;;  %v2484_v57 = vld [vmem:[#allocation14 + $0x134] sm:$0xf0] }
 0x340   :  { %1531 = vmatpush.bf16.msrb.mxu0 %v2208_v45  ;;  %v2241_v45 = vld [vmem:[#allocation14 + $0xe8] sm:$0xf0] }
 0x341   :  { %v2244_v54 = vor.u32 %v2473_v44, %v2241_v45  ;;  %1557 = vmatpush.bf16.msrb.mxu2 %v2148_v13 }
 0x342   :  { %1520 = vmatpush.bf16.msra.mxu3 %v2128_v17  ;;  %v2297_v17 = vld [vmem:[#allocation14 + $0x158] sm:$0xf0] }
 0x343   :  { %v2300_v21 = vor.u32 %v2487_v12, %v2297_v17  ;;  %v2276_v12 = vor.u32 %v2481_v5, %v2273_v6  ;;  %v2463_v17 = vld [vmem:[#allocation14 + $0x94] sm:$0xf] }
 0x344   :  { %1532 = vmatpush.bf16.msrb.mxu0 %v2200_v62  ;;  %v2447_v62 = vld [vmem:[#allocation14 + $0x14] sm:$0xf] }
 0x345   :  { %v2140_v4 = vor.u32 %v2447_v62, %v2137_v63  ;;  %v2465_v63 = vld [vmem:[#allocation14 + $0xa4] sm:$0xf] }
 0x346   :  { %1565 = vmatpush.bf16.msrb.mxu3 %v2252_v14 }
 0x347   :  { %1558 = vmatpush.bf16.msrb.mxu2 %v2140_v4 }
 0x348   :  { %1533 = vmatpush.bf16.msrb.mxu0 %v2192_v18 }
 0x34a   :  { %1566 = vmatpush.bf16.msrb.mxu3 %v2244_v54 }
 0x34c   :  { %1578 = vmatpush.bf16.msra.mxu0 %v2316_v42  ;;  %v2480_v42 = vld [vmem:[#allocation14 + $0x114] sm:$0xf0] }
 0x34e   :  { %1567 = vmatpush.bf16.msrb.mxu3 %v2236_v20  ;;  %v2265_v20 = vld [vmem:[#allocation14 + $0x118] sm:$0xf0] }
 0x3a8   :  { %v1068_v49 = vpop.f32.mrf.mxu0  ;;  %v1081_v50 = vpop.f32.mrf.mxu1 }
 0x3a9   :  { %v1069_v55 = vadd.f32 %v1068_v49, %v1053_v33  ;;  %v1082_v56 = vadd.f32 %v1081_v50, %v1054_v36  ;;  %v2486_v33 = vld [vmem:[#allocation14 + $0x144] sm:$0xf0]  ;;  %v2489_v50 = vld [vmem:[#allocation14 + $0x164] sm:$0xf] }
 0x3aa   :  { %v2288_v43 = vor.u32 %v2486_v33, %v2287_v32  ;;  %v2225_v33 = vld [vmem:[#allocation14 + $0xc8] sm:$0xf0] }
 0x3ab   :  { %v3023_v15 = vmax.f32 %v1069_v55, 0.0  ;;  %v3025_v0 = vmax.f32 %v1082_v56, 0.0  ;;  %v2308_v55 = vor.u32 %v2489_v50, %v2305_v51  ;;  %v2279_v56 = vld [vmem:[#allocation14 + $0x130] sm:$0xf]  ;;  %v2217_v50 = vld [vmem:[#allocation14 + $0xb8] sm:$0xf0] }
 0x3ac   :  { %1542 = vmatpush.bf16.msrb.mxu1 %v2288_v43  ;;  %v2280_v3 = vor.u32 %v2484_v57, %v2279_v56  ;;  %v2483_v51 = vld [vmem:[#allocation14 + $0x134] sm:$0xf]  ;;  %v2255_v56 = vld [vmem:[#allocation14 + $0x100] sm:$0xf] }
 0x3ad   :  { %v1101_v7 = vrot.slane %v3023_v15, 4  ;;  %v1122_v8 = vmul.f32 %v3023_v15, %v3023_v15  ;;  %v1107_v34 = vrot.slane %v3025_v0, 4  ;;  %v1123_v9 = vmul.f32 %v3025_v0, %v3025_v0  ;;  %1579 = vmatpush.bf16.msra.mxu0 %v2308_v55  ;;  %v2281_v55 = vld [vmem:[#allocation14 + $0x138] sm:$0xf0] }
 0x3af   :  { %v1102_v22 = vadd.f32 %v1101_v7, %v3023_v15  ;;  %v1125_v35 = vrot.slane %v1122_v8, 4  ;;  %v1108_v11 = vadd.f32 %v1107_v34, %v3025_v0  ;;  %v1131_v23 = vrot.slane %v1123_v9, 4  ;;  %v1094_v24 = vpop.f32.mrf.mxu2 }
 0x3b0   :  { %v1095_v28 = vadd.f32 %v1094_v24, %v1055_v61  ;;  %v1070_v29 = vpop.f32.mrf.mxu0  ;;  %v1083_v30 = vpop.f32.mrf.mxu1  ;;  %1543 = vmatpush.bf16.msrb.mxu1 %v2280_v3  ;;  %v2284_v3 = vor.u32 %v2483_v51, %v2281_v55 }
 0x3b1   :  { %v1103_v36 = vrot.slane %v1102_v22, 2  ;;  %v1126_v37 = vadd.f32 %v1125_v35, %v1122_v8  ;;  %v1109_v38 = vrot.slane %v1108_v11, 2  ;;  %v1132_v39 = vadd.f32 %v1131_v23, %v1123_v9  ;;  %v2482_v35 = vld [vmem:[#allocation14 + $0x124] sm:$0xf0]  ;;  %v2469_v29 = vld [vmem:[#allocation14 + $0xc4] sm:$0xf]  ;;  %1580 = vmatpush.bf16.msra.mxu0 %v2300_v21 }
 0x3b2   :  { %v3035_v41 = vmax.f32 %v1095_v28, 0.0  ;;  %v2129_v28 = vld [vmem:[#allocation14 + $0x8] sm:$0xf0] }
 0x3b3   :  { %v1104_v46 = vadd.f32 %v1103_v36, %v1102_v22  ;;  %v1127_v47 = vrot.slane %v1126_v37, 2  ;;  %v1110_v48 = vadd.f32 %v1109_v38, %v1108_v11  ;;  %v1133_v49 = vrot.slane %v1132_v39, 2  ;;  %v2271_v22 = vld [vmem:[#allocation14 + $0x120] sm:$0xf]  ;;  %v2485_v36 = vld [vmem:[#allocation14 + $0x144] sm:$0xf] }
 0x3b4   :  { %v1113_v53 = vrot.slane %v3035_v41, 4  ;;  %v1124_v16 = vmul.f32 %v3035_v41, %v3035_v41  ;;  %v2272_v14 = vor.u32 %v2482_v35, %v2271_v22  ;;  %v2132_v32 = vor.u32 %v2445_v27, %v2129_v28  ;;  %v2193_v27 = vld [vmem:[#allocation14 + $0x88] sm:$0xf0] }
 0x3b5   :  { %v1105_v58 = vrot.slane %v1104_v46, 1  ;;  %v1128_v59 = vadd.f32 %v1127_v47, %v1126_v37  ;;  %v1111_v60 = vrot.slane %v1110_v48, 1  ;;  %v1134_v61 = vadd.f32 %v1133_v49, %v1132_v39  ;;  %v2467_v49 = vld [vmem:[#allocation14 + $0xb4] sm:$0xf] }
 0x3b6   :  { %v1114_v1 = vadd.f32 %v1113_v53, %v3035_v41  ;;  %v1137_v2 = vrot.slane %v1124_v16, 4  ;;  %1544 = vmatpush.bf16.msrb.mxu1 %v2272_v14  ;;  %v2292_v47 = vor.u32 %v2485_v36, %v2289_v40  ;;  %1559 = vmatpush.bf16.msrb.mxu2 %v2132_v32  ;;  %v2220_v62 = vor.u32 %v2467_v49, %v2217_v50 }
 0x3b7   :  { %v1106_v7 = vadd.f32 %v1105_v58, %v1104_v46  ;;  %v1129_v8 = vrot.slane %v1128_v59, 1  ;;  %v1112_v34 = vadd.f32 %v1111_v60, %v1110_v48  ;;  %v1135_v9 = vrot.slane %v1134_v61, 1  ;;  %v1096_v10 = vpop.f32.mrf.mxu2  ;;  %v2478_v58 = vld [vmem:[#allocation14 + $0x104] sm:$0xf0] }
 0x3b8   :  { %v1115_v18 = vrot.slane %v1114_v1, 2  ;;  %v1138_v19 = vadd.f32 %v1137_v2, %v1124_v16  ;;  %v2228_v46 = vor.u32 %v2469_v29, %v2225_v33  ;;  %v2264_v48 = vor.u32 %v2480_v42, %v2263_v26  ;;  %1581 = vmatpush.bf16.msra.mxu0 %v2292_v47  ;;  %v2477_v29 = vld [vmem:[#allocation14 + $0x104] sm:$0xf]  ;;  %v1205_v47 = vld [vmem:[%s3113_s9] sm:$0x7] }
 0x3b9   :  { %v3042_v11 = vmul.f32 %v1106_v7, %v2976_v52  ;;  %v1130_v23 = vadd.f32 %v1129_v8, %v1128_v59  ;;  %v3045_v24 = vmul.f32 %v1112_v34, %v2976_v52  ;;  %v1136_v25 = vadd.f32 %v1135_v9, %v1134_v61 }
 0x3ba   :  { %v1116_v30 = vadd.f32 %v1115_v18, %v1114_v1  ;;  %v1139_v31 = vrot.slane %v1138_v19, 2  ;;  %1568 = vmatpush.bf16.msrb.mxu3 %v2228_v46  ;;  %1545 = vmatpush.bf16.msrb.mxu1 %v2264_v48  ;;  %v2209_v1 = vld [vmem:[#allocation14 + $0xa8] sm:$0xf0]  ;;  %v2256_v4 = vor.u32 %v2478_v58, %v2255_v56  ;;  %v2201_v18 = vld [vmem:[#allocation14 + $0x98] sm:$0xf0]  ;;  %v1209_v6 = vperm.slane %v1205_v47, 2 }
 0x3bb   :  { %v1143_v37 = vmul.f32 %v1130_v23, %v2976_v52  ;;  %v1146_v38 = vmul.f32 %v3042_v11, %v3042_v11  ;;  %v1144_v39 = vmul.f32 %v1136_v25, %v2976_v52  ;;  %v1147_v43 = vmul.f32 %v3045_v24, %v3045_v24  ;;  %v2461_v25 = vld [vmem:[#allocation14 + $0x84] sm:$0xf] }
 0x3bc   :  { %v1117_v13 = vrot.slane %v1116_v30, 1  ;;  %v1140_v44 = vadd.f32 %v1139_v31, %v1138_v19  ;;  %v2212_v9 = vor.u32 %v2465_v63, %v2209_v1  ;;  %1582 = vmatpush.bf16.msra.mxu0 %v2284_v3  ;;  %v2479_v19 = vld [vmem:[#allocation14 + $0x114] sm:$0xf]  ;;  %v2204_v22 = vor.u32 %v2463_v17, %v2201_v18 }
 0x3bd   :  { %v1149_v45 = vsub.f32 %v1143_v37, %v1146_v38  ;;  %v1150_v53 = vsub.f32 %v1144_v39, %v1147_v43  ;;  %v2268_v23 = vor.u32 %v2479_v19, %v2265_v20  ;;  %v2196_v33 = vor.u32 %v2461_v25, %v2193_v27  ;;  %v1194_v43 = vld [vmem:[%s3112_s8] sm:$0x7]  ;;  %v2497_v25 = vld [vmem:[#allocation17 + $0x20] sm:$0xff] }
 0x3be   :  { %v1118_v16 = vadd.f32 %v1117_v13, %v1116_v30  ;;  %v1141_v54 = vrot.slane %v1140_v44, 1  ;;  %1569 = vmatpush.bf16.msrb.mxu3 %v2220_v62  ;;  %1546 = vmatpush.bf16.msrb.mxu1 %v2256_v4  ;;  %v2257_v30 = vld [vmem:[#allocation14 + $0x108] sm:$0xf0]  ;;  %v1196_v50 = vperm.slane %v1194_v43, 0 }
 0x3bf   :  { %v1152_v57 = vmax.f32 %v1149_v45, 0.0  ;;  %v1153_v59 = vmax.f32 %v1150_v53, 0.0  ;;  %v2260_v37 = vor.u32 %v2477_v29, %v2257_v30  ;;  %v1155_v45 = vsub.f32 %v3023_v15, %v3042_v11  ;;  %v2508_v30 = vld [vmem:[#allocation17 + $0x78] sm:$0xff] }
 0x3c0   :  { %v3054_v60 = vmul.f32 %v1118_v16, %v2976_v52  ;;  %v1142_v61 = vadd.f32 %v1141_v54, %v1140_v44  ;;  %1583 = vmatpush.bf16.msra.mxu0 %v2276_v12  ;;  %v1156_v53 = vsub.f32 %v3025_v0, %v3045_v24  ;;  %v1197_v16 = vperm.slane %v1194_v43, 1  ;;  %v2499_v12 = vld [vmem:[#allocation17 + $0x30] sm:$0xff]  ;;  %1818 = vmatpush.bf16.msra.mxu2 %v2508_v30 }
 0x3c1   :  { %v1158_v2 = vadd.f32 1e-05, %v1152_v57  ;;  %v1159_v7 = vadd.f32 1e-05, %v1153_v59  ;;  %v1207_v11 = vperm.slane %v1205_v47, 0  ;;  %v1208_v57 = vperm.slane %v1205_v47, 1 }
 0x3c2   :  { %v1145_v8 = vmul.f32 %v1142_v61, %v2976_v52  ;;  %v1148_v34 = vmul.f32 %v3054_v60, %v3054_v60  ;;  %1570 = vmatpush.bf16.msrb.mxu3 %v2212_v9  ;;  %v1157_v1 = vsub.f32 %v3035_v41, %v3054_v60  ;;  %v1198_v24 = vperm.slane %v1194_v43, 2  ;;  %v1267_v41 = vld [vmem:[%s3115_s11] sm:$0x3]  ;;  %v2500_v60 = vld [vmem:[#allocation17 + $0x38] sm:$0xff]  ;;  %v2506_v47 = vld [vmem:[#allocation17 + $0x68] sm:$0xff] }
 0x3c3   :  { %2538 = vrsqrt.f32 %v1158_v2  ;;  %vm1167_vm5 = vweird.f32 %v1158_v2  ;;  %vm1177_vm7 = vweird.f32 %v1159_v7  ;;  %1805 = vmatpush.bf16.msra.mxu1 %v2500_v60  ;;  %v2495_v43 = vld [vmem:[#allocation17 + $0x10] sm:$0xff]  ;;  %v2502_v60 = vld [vmem:[#allocation17 + $0x48] sm:$0xff] }
 0x3c4   :  { %2540 = vrsqrt.f32 %v1159_v7  ;;  %v1151_v10 = vsub.f32 %v1145_v8, %v1148_v34  ;;  %1584 = vmatpush.bf16.msra.mxu0 %v2268_v23 }
 0x3c6   :  { %v1154_v21 = vmax.f32 %v1151_v10, 0.0  ;;  %1571 = vmatpush.bf16.msrb.mxu3 %v2204_v22  ;;  %v1269_v10 = vperm.slane %v1267_v41, 0 }
 0x3c7   :  { %1806 = vmatpush.bf16.msra.mxu1 %v2499_v12 }
 0x3c8   :  { %v1160_v35 = vadd.f32 1e-05, %v1154_v21  ;;  %1585 = vmatpush.bf16.msra.mxu0 %v2260_v37  ;;  %v2498_v21 = vld [vmem:[#allocation17 + $0x28] sm:$0xff] }
 0x3c9   :  { %v2539_v28 = vpop.eup %2538 }
 0x3ca   :  { %v2541_v31 = vpop.eup %2540  ;;  %v1162_v14 = vmul.f32 %v2539_v28, %v1158_v2  ;;  %2542 = vrsqrt.f32 %v1160_v35  ;;  %1572 = vmatpush.bf16.msrb.mxu3 %v2196_v33  ;;  %vm1168_vm3 = vweird.f32 %v2539_v28  ;;  %vm1187_vm9 = vweird.f32 %v1160_v35  ;;  %v2496_v33 = vld [vmem:[#allocation17 + $0x18] sm:$0xff] }
 0x3cb   :  { %v1172_v32 = vmul.f32 %v2541_v31, %v1159_v7  ;;  %vm1178_vm4 = vweird.f32 %v2541_v31  ;;  %vm1169_vm6 = vmor %vm1167_vm5, %vm1168_vm3  ;;  %1807 = vmatpush.bf16.msra.mxu1 %v2498_v21 }
 0x3cc   :  { %v1163_v36 = vmul.f32 %v2539_v28, %v1162_v14  ;;  %vm1179_vm8 = vmor %vm1177_vm7, %vm1178_vm4 }
 0x3cd   :  { %v1173_v38 = vmul.f32 %v2541_v31, %v1172_v32 }
 0x3ce   :  { %v1164_v39 = vmul.f32 0.5, %v1163_v36 }
 0x3cf   :  { %v1174_v40 = vmul.f32 0.5, %v1173_v38  ;;  %1808 = vmatpush.bf16.msra.mxu1 %v2497_v25  ;;  %v1270_v38 = vperm.slane %v1267_v41, 1 }
 0x3d0   :  { %v2543_v26 = vpop.eup %2542  ;;  %v1165_v42 = vsub.f32 1.5, %v1164_v39 }
 0x3d1   :  { %v1175_v13 = vsub.f32 1.5, %v1174_v40  ;;  %v1182_v44 = vmul.f32 %v2543_v26, %v1160_v35  ;;  %vm1188_vm10 = vweird.f32 %v2543_v26  ;;  %v2507_v40 = vld [vmem:[#allocation17 + $0x70] sm:$0xff] }
 0x3d2   :  { %v1166_v46 = vmul.f32 %v2539_v28, %v1165_v42  ;;  %vm1189_vm11 = vmor %vm1187_vm9, %vm1188_vm10  ;;  %1819 = vmatpush.bf16.msra.mxu2 %v2507_v40 }
 0x3d3   :  { %v1176_v48 = vmul.f32 %v2541_v31, %v1175_v13  ;;  %v1183_v49 = vmul.f32 %v2543_v26, %v1182_v44  ;;  %1809 = vmatpush.bf16.msra.mxu1 %v2496_v33 }
 0x3d4   :  { %v1170_v51 = vsel %vm1169_vm6, %v2539_v28, %v1166_v46 }
 0x3d5   :  { %v1191_v54 = vmul.f32 %v1170_v51, %v1155_v45  ;;  %v1180_v55 = vsel %vm1179_vm8, %v2541_v31, %v1176_v48  ;;  %v1184_v15 = vmul.f32 0.5, %v1183_v49  ;;  %v2494_v51 = vld [vmem:[#allocation17 + $0x8] sm:$0xff] }
 0x3d6   :  { %v1192_v56 = vmul.f32 %v1180_v55, %v1156_v53  ;;  %1820 = vmatpush.bf16.msra.mxu2 %v2506_v47  ;;  %v2505_v53 = vld [vmem:[#allocation17 + $0x60] sm:$0xff] }
 0x3d7   :  { %v1185_v58 = vsub.f32 1.5, %v1184_v15  ;;  %v1202_v59 = vmul.f32 %v1196_v50, %v1191_v54  ;;  %1810 = vmatpush.bf16.msra.mxu1 %v2495_v43 }
 0x3d8   :  { %v1203_v61 = vmul.f32 %v1197_v16, %v1192_v56 }
 0x3d9   :  { %v1186_v62 = vmul.f32 %v2543_v26, %v1185_v58  ;;  %v1213_v63 = vadd.f32 %v1207_v11, %v1202_v59  ;;  %v2493_v11 = vld [vmem:[#allocation17] sm:$0xff]  ;;  %v2504_v59 = vld [vmem:[#allocation17 + $0x58] sm:$0xff] }
 0x3da   :  { %v1214_v0 = vadd.f32 %v1208_v57, %v1203_v61  ;;  %1821 = vmatpush.bf16.msra.mxu2 %v2505_v53 }
 0x3db   :  { %v1190_v2 = vsel %vm1189_vm11, %v2543_v26, %v1186_v62  ;;  %v1216_v3 = vpack.c.bf16 %v1213_v63, %v1213_v63  ;;  %1811 = vmatpush.bf16.msra.mxu1 %v2494_v51 }
 0x3dc   :  { %v1193_v4 = vmul.f32 %v1190_v2, %v1157_v1  ;;  %v1217_v5 = vpack.c.bf16 %v1214_v0, %v1214_v0 }
 0x3dd   :  { %1521 = vmatmul.bf16.vlgmr.msra.gmra.mxu3 %v1216_v3  ;;  %1560 = vmatmul.bf16.vlgmr.msrb.gmra.mxu2 %v1216_v3 }
 0x3de   :  { %1534 = vmatmul.bf16.vlgmr.msrb.gmra.mxu0 %v1217_v5  ;;  %v1204_v7 = vmul.f32 %v1198_v24, %v1193_v4  ;;  %1822 = vmatpush.bf16.msra.mxu2 %v2504_v59  ;;  %v2503_v4 = vld [vmem:[#allocation17 + $0x50] sm:$0xff] }
 0x3df   :  { %1812 = vmatpush.bf16.msra.mxu1 %v2493_v11 }
 0x3e0   :  { %v1215_v8 = vadd.f32 %v1209_v6, %v1204_v7 }
 0x3e2   :  { %v1218_v34 = vpack.c.bf16 %v1215_v8, %v1215_v8  ;;  %1823 = vmatpush.bf16.msra.mxu2 %v2503_v4 }
 0x3e4   :  { %1547 = vmatmul.bf16.vlgmr.msrb.gmra.mxu1 %v1218_v34 }
 0x3e6   :  { %1824 = vmatpush.bf16.msra.mxu2 %v2502_v60 }
 0x3ed   :  { %1573 = vmatmul.bf16.vlgmr.msrb.gmra.mxu3 %v1217_v5 }
 0x3ee   :  { %1586 = vmatmul.bf16.vlgmr.msra.gmra.mxu0 %v1218_v34 }
 0x45b   :  { %v1535_v9 = vpop.f32.mrf.mxu0 }
 0x460   :  { %v1522_v17 = vpop.f32.mrf.mxu3  ;;  %v1561_v18 = vpop.f32.mrf.mxu2 }
 0x461   :  { %v1523_v19 = vadd.f32 %v1522_v17, %v1269_v10  ;;  %v1548_v20 = vpop.f32.mrf.mxu1  ;;  %v1562_v45 = vadd.f32 %v1561_v18, %v1270_v38  ;;  %v2501_v18 = vld [vmem:[#allocation17 + $0x40] sm:$0xff] }
 0x462   :  { %1825 = vmatpush.bf16.msra.mxu2 %v2501_v18 }
 0x463   :  { %v1536_v22 = vadd.f32 %v1535_v9, %v1523_v19  ;;  %v1537_v35 = vpop.f32.mrf.mxu0 }
 0x465   :  { %v1549_v23 = vadd.f32 %v1548_v20, %v1536_v22 }
 0x467   :  { %v3074_v27 = vmax.f32 %v1549_v23, 0.0 }
 0x468   :  { %v1524_v28 = vpop.f32.mrf.mxu3  ;;  %v1563_v29 = vpop.f32.mrf.mxu2 }
 0x469   :  { %v1593_v31 = vrot.slane %v3074_v27, 4  ;;  %v1607_v14 = vmul.f32 %v3074_v27, %v3074_v27  ;;  %v1550_v32 = vpop.f32.mrf.mxu1 }
 0x46a   :  { %v1655_v32 = vld [vmem:[#allocation15] sm:$0x3] }
 0x46b   :  { %v1594_v36 = vadd.f32 %v1593_v31, %v3074_v27  ;;  %v1609_v37 = vrot.slane %v1607_v14, 4  ;;  %v1587_v39 = vpop.f32.mrf.mxu0 }
 0x46d   :  { %v1595_v26 = vrot.slane %v1594_v36, 2  ;;  %v1610_v42 = vadd.f32 %v1609_v37, %v1607_v14 }
 0x46f   :  { %v1596_v13 = vadd.f32 %v1595_v26, %v1594_v36  ;;  %v1611_v44 = vrot.slane %v1610_v42, 2  ;;  %v1663_v36 = vld [vmem:[%s3117_s13] sm:$0x3]  ;;  %s2845_s13 = smov [#allocation18]  }
 0x470   :  { %v1574_v46 = vpop.f32.mrf.mxu3  ;;  %v1665_v40 = vperm.slane %v1663_v36, 0  ;;  %v1666_v53 = vperm.slane %v1663_v36, 1  ;;  %s1837_s28 = sshll.u32 %s2845_s13, 4  ;;  %s1838_s28 = int_to_ptr.vmem [resolvable:$true] %s1837_s28 }
 0x471   :  { %v1597_v48 = vrot.slane %v1596_v13, 1  ;;  %v1612_v49 = vadd.f32 %v1611_v44, %v1610_v42  ;;  %v1575_v50 = vadd.f32 %v1574_v46, %v1562_v45  ;;  %1842 = dma.vmem_to_hbm [thread:$0]  %s1838_s28, 32, %s1840_s3, [#allocation5]  }
 0x473   :  { %v1598_v16 = vadd.f32 %v1597_v48, %v1596_v13  ;;  %v1613_v54 = vrot.slane %v1612_v49, 1  ;;  %v1588_v55 = vadd.f32 %v1587_v39, %v1575_v50  ;;  %v1589_v15 = vpop.f32.mrf.mxu0 }
 0x475   :  { %v1605_v56 = vmul.f32 %v1598_v16, %v2976_v52  ;;  %v1614_v57 = vadd.f32 %v1613_v54, %v1612_v49  ;;  %v3081_v58 = vmax.f32 %v1588_v55, 0.0 }
 0x477   :  { %v1621_v61 = vmul.f32 %v1614_v57, %v2976_v52  ;;  %v1623_v62 = vmul.f32 %v1605_v56, %v1605_v56  ;;  %v1599_v63 = vrot.slane %v3081_v58, 4  ;;  %v1608_v1 = vmul.f32 %v3081_v58, %v3081_v58 }
 0x478   :  { %v1576_v0 = vpop.f32.mrf.mxu3  ;;  %v1629_v37 = vsub.f32 %v3074_v27, %v1605_v56  ;;  %v1658_v27 = vperm.slane %v1655_v32, 1  ;;  %v2535_v56 = vld [vmem:[%s3119_s15] ss:$0 sm:$0xff] }
 0x479   :  { %v1625_v24 = vsub.f32 %v1621_v61, %v1623_v62  ;;  %v1600_v2 = vadd.f32 %v1599_v63, %v3081_v58  ;;  %v1615_v3 = vrot.slane %v1608_v1, 4 }
 0x47b   :  { %v1627_v5 = vmax.f32 %v1625_v24, 0.0  ;;  %v1601_v6 = vrot.slane %v1600_v2, 2  ;;  %v1616_v7 = vadd.f32 %v1615_v3, %v1608_v1 }
 0x47d   :  { %v1631_v8 = vadd.f32 1e-05, %v1627_v5  ;;  %v1602_v34 = vadd.f32 %v1601_v6, %v1600_v2  ;;  %v1617_v41 = vrot.slane %v1616_v7, 2 }
 0x47f   :  { %2544 = vrsqrt.f32 %v1631_v8  ;;  %v1603_v9 = vrot.slane %v1602_v34, 1  ;;  %v1618_v10 = vadd.f32 %v1617_v41, %v1616_v7  ;;  %vm1639_vm13 = vweird.f32 %v1631_v8 }
 0x481   :  { %v1604_v12 = vadd.f32 %v1603_v9, %v1602_v34  ;;  %v1619_v17 = vrot.slane %v1618_v10, 1 }
 0x483   :  { %v1606_v19 = vmul.f32 %v1604_v12, %v2976_v52  ;;  %v1620_v20 = vadd.f32 %v1619_v17, %v1618_v10 }
 0x485   :  { %v2545_v21 = vpop.eup %2544  ;;  %v1624_v22 = vmul.f32 %v1606_v19, %v1606_v19  ;;  %v1622_v23 = vmul.f32 %v1620_v20, %v2976_v52  ;;  %v1657_v52 = vperm.slane %v1655_v32, 0  ;;  %v1630_v49 = vsub.f32 %v3081_v58, %v1606_v19 }
 0x486   :  { %v1634_v35 = vmul.f32 %v2545_v21, %v1631_v8  ;;  %vm1640_vm12 = vweird.f32 %v2545_v21 }
 0x487   :  { %v1626_v28 = vsub.f32 %v1622_v23, %v1624_v22  ;;  %vm1641_vm14 = vmor %vm1639_vm13, %vm1640_vm12 }
 0x488   :  { %v1635_v25 = vmul.f32 %v2545_v21, %v1634_v35 }
 0x489   :  { %v1628_v30 = vmax.f32 %v1626_v28, 0.0 }
 0x48a   :  { %v1636_v29 = vmul.f32 0.5, %v1635_v25 }
 0x48b   :  { %v1632_v14 = vadd.f32 1e-05, %v1628_v30 }
 0x48c   :  { %v1637_v31 = vsub.f32 1.5, %v1636_v29 }
 0x48d   :  { %2546 = vrsqrt.f32 %v1632_v14  ;;  %vm1649_vm0 = vweird.f32 %v1632_v14 }
 0x48e   :  { %v1638_v33 = vmul.f32 %v2545_v21, %v1637_v31 }
 0x490   :  { %v1642_v38 = vsel %vm1641_vm14, %v2545_v21, %v1638_v33 }
 0x491   :  { %v1653_v39 = vmul.f32 %v1642_v38, %v1629_v37 }
 0x493   :  { %v1661_v26 = vmul.f32 %v1657_v52, %v1653_v39  ;;  %v2547_v42 = vpop.eup %2546 }
 0x494   :  { %v1644_v13 = vmul.f32 %v2547_v42, %v1632_v14  ;;  %vm1650_vm15 = vweird.f32 %v2547_v42 }
 0x495   :  { %v1669_v43 = vadd.f32 %v1665_v40, %v1661_v26  ;;  %vm1651_vm1 = vmor %vm1649_vm0, %vm1650_vm15 }
 0x496   :  { %v1645_v45 = vmul.f32 %v2547_v42, %v1644_v13 }
 0x497   :  { %v1671_v44 = vpack.c.bf16 %v1669_v43, %v1669_v43 }
 0x498   :  { %v1646_v46 = vmul.f32 0.5, %v1645_v45 }
 0x499   :  { %1813 = vmatmul.bf16.vlgmr.msra.gmra.mxu1 %v1671_v44 }
 0x49a   :  { %v1647_v47 = vsub.f32 1.5, %v1646_v46 }
 0x49c   :  { %v1648_v48 = vmul.f32 %v2547_v42, %v1647_v47 }
 0x49e   :  { %v1652_v50 = vsel %vm1651_vm1, %v2547_v42, %v1648_v48 }
 0x49f   :  { %v1654_v51 = vmul.f32 %v1652_v50, %v1630_v49 }
 0x4a1   :  { %v1662_v16 = vmul.f32 %v1658_v27, %v1654_v51 }
 0x4a3   :  { %v1670_v54 = vadd.f32 %v1666_v53, %v1662_v16 }
 0x4a5   :  { %v1672_v55 = vpack.c.bf16 %v1670_v54, %v1670_v54 }
 0x4a7   :  { %1826 = vmatmul.bf16.vlgmr.msra.gmra.mxu2 %v1672_v55 }
 0x516   :  { %v1814_v15 = vpop.f32.mrf.mxu1 }
 0x517   :  { %v1815_v57 = vadd.f32 %v2535_v56, %v1814_v15 }
 0x51e   :  { %v1816_v11 = vpop.f32.mrf.mxu1 }
 0x52a   :  { %v1827_v58 = vpop.f32.mrf.mxu2 }
 0x52b   :  { %v1828_v59 = vadd.f32 %v1827_v58, %v1815_v57 }
 0x52d   :  { %1831 = vst [vmem:[#allocation19] sm:$0xff] %v1828_v59 }
 0x52e   :  { %1853 = dma.vmem_to_hbm [thread:$0]  %s1849_s20, 128, %s1851_s2, [#allocation20]  }
 0x532   :  { %v1829_v61 = vpop.f32.mrf.mxu2 }
 0x533   :  { %2822 = dma.done.wait [#allocation5], 32  }
 0x534   :  { %2823 = vsyncadd [#allocation5], 4294967264 }
 0x535   :  { %2824 = dma.done.wait [#allocation20], 128  }
 0x536   :  { %2825 = vsyncadd [#allocation20], 4294967168 }
 0x537   :  { %1862 = vsyncpa [#allocation4], 1 }
 0x538   :  { %1863 = vsyncpa [#allocation7], 1 }
 0x539   :  { %1864 = vsyncpa [#allocation10], 1 }
 0x53a   :  { %1865 = vsyncpa [#allocation13], 1 }
 0x53b   :  { %1866 = vsyncpa [#allocation16], 1 }
 0x53c   :  { %1867 = vsyncpa [#allocation5], 1 }
 0x53d   :  { %1868 = vsyncpa [#allocation20], 1 }

</bundles_post_ra>
